<compile_context>
chip_gen: v7x
topology: tpu7x:2x2x1
jax: 0.10.0
libtpu: 0.0.40
codegen_flags: <defaults>
</compile_context>

<pallas_src>
import functools
import numpy as np
import jax
import jax.numpy as jnp
from jax import lax
from jax.experimental import pallas as pl
from jax.experimental.pallas import tpu as pltpu

POOL_SIZES = (1, 2, 3, 6)
NUM_CLASSES = 5
AUX_CH = 16          # backbone.low_ch      (stand-in)
FEAT_CH = 32         # backbone.feature_ch  (stand-in)
BN_EPS = 1e-5

# Tile preferences.  Chosen so (TM*TK + TK*TN)*2B (bf16, double buffered) plus
# the (TM,TN) f32 accumulator stays far below the 32 MiB scoped-VMEM default on
# every generation (v7x has only 64 MiB physical VMEM per TensorCore).
TM_PREF = 256
TN_PREF = 256
TK_PREF = 512
TD_PREF = 512
VMEM_LIMIT = 32 * 1024 * 1024


def _ru(x, m):
    return ((x + m - 1) // m) * m


def _pick_tile(dim, pref):
    """Largest multiple of 128 that divides `dim` (itself a 128-multiple) and
    is <= pref."""
    if dim <= pref:
        return dim
    t = (pref // 128) * 128
    while dim % t:
        t -= 128
    return t


def _gemm_m_pad(m, tm=TM_PREF):
    mp = _ru(m, 16)                 # bf16 sublane quantum
    return mp if mp <= tm else _ru(m, 128)


# ----------------------------------------------------------------------------
# Kernel 1: tiled GEMM  Y = maybe_mask(maybe_relu(X @ W + bias))
#   grid = (M tiles, N tiles, K tiles); K is the reduction axis ("arbitrary"),
#   f32 accumulator lives in VMEM scratch.
# ----------------------------------------------------------------------------
def _gemm_kernel(*refs, relu, has_mask):
    if has_mask:
        x_ref, w_ref, b_ref, m_ref, o_ref, acc_ref = refs
    else:
        x_ref, w_ref, b_ref, o_ref, acc_ref = refs
        m_ref = None

    @pl.when(pl.program_id(2) == 0)
    def _init():
        acc_ref[...] = jnp.zeros_like(acc_ref)

    acc_ref[...] += jnp.dot(x_ref[...], w_ref[...],
                            preferred_element_type=jnp.float32)

    @pl.when(pl.program_id(2) == pl.num_programs(2) - 1)
    def _finalize():
        y = acc_ref[...] + b_ref[...]
        if relu:
            y = jnp.maximum(y, 0.0)
        if has_mask:
            y = y * m_ref[...]
        o_ref[...] = y.astype(o_ref.dtype)


def gemm_bias_act(x, w_pad, bias_pad, mask_pad=None, relu=False,
                  out_dtype=jnp.float32):
    """x: (M, K) activation (any float dtype).  w_pad: (Kp, Np) pre-padded bf16
    weight (BN scale already folded in).  bias_pad: (1, Np) f32.
    mask_pad (optional): (Mp, Np) f32 multiplied into the epilogue.
    Returns the padded (Mp, Np) result."""
    M, K = x.shape
    Kp, Np = w_pad.shape
    assert K <= Kp and Kp % 128 == 0 and Np % 128 == 0
    Mp = _gemm_m_pad(M)
    TM = Mp if Mp <= TM_PREF else _pick_tile(Mp, TM_PREF)
    TN = _pick_tile(Np, TN_PREF)
    TK = _pick_tile(Kp, TK_PREF)

    xp = jnp.pad(x, ((0, Mp - M), (0, Kp - K))).astype(jnp.bfloat16)

    in_specs = [
        pl.BlockSpec((TM, TK), lambda m, n, k: (m, k)),
        pl.BlockSpec((TK, TN), lambda m, n, k: (k, n)),
        pl.BlockSpec((1, TN), lambda m, n, k: (0, n)),
    ]
    args = [xp, w_pad, bias_pad]
    if mask_pad is not None:
        assert mask_pad.shape == (Mp, Np), (mask_pad.shape, (Mp, Np))
        in_specs.append(pl.BlockSpec((TM, TN), lambda m, n, k: (m, n)))
        args.append(mask_pad)

    out = pl.pallas_call(
        functools.partial(_gemm_kernel, relu=relu,
                          has_mask=mask_pad is not None),
        out_shape=jax.ShapeDtypeStruct((Mp, Np), out_dtype),
        grid=(Mp // TM, Np // TN, Kp // TK),
        in_specs=in_specs,
        out_specs=pl.BlockSpec((TM, TN), lambda m, n, k: (m, n)),
        scratch_shapes=[pltpu.VMEM((TM, TN), jnp.float32)],
        compiler_params=pltpu.CompilerParams(
            dimension_semantics=("parallel", "parallel", "arbitrary"),
            vmem_limit_bytes=VMEM_LIMIT),
        cost_estimate=pl.CostEstimate(
            flops=2 * Mp * Np * Kp,
            transcendentals=0,
            bytes_accessed=Mp * Kp * 2 + Kp * Np * 2 + Mp * Np * 4),
    )(*args)
    return out


# ----------------------------------------------------------------------------
# Kernel 2: batched left matmul  out[g] = A @ X[g]
#   Used for the adaptive pooling, the per-stage bilinear "upsample-gather",
#   and both passes of the separable final bilinear upsample.
#   grid = (batch, D tiles), both parallel.
# ----------------------------------------------------------------------------
def _lmatmul_kernel(a_ref, x_ref, o_ref):
    o_ref[0] = jnp.dot(a_ref[...], x_ref[0],
                       preferred_element_type=jnp.float32).astype(o_ref.dtype)


def batched_lmatmul(a_pad, x, out_dtype=jnp.bfloat16):
    """a_pad: (So, Sip) pre-padded bf16 spatial operator (zero-padded columns).
    x: (G, Si, D) activation with Si <= Sip.  Returns padded (G, So, Dp)."""
    G, Si, D = x.shape
    So, Sip = a_pad.shape
    assert Si <= Sip
    Dp = _ru(D, 128)
    TD = _pick_tile(Dp, TD_PREF)
    xp = jnp.pad(x, ((0, 0), (0, Sip - Si), (0, Dp - D))).astype(jnp.bfloat16)

    return pl.pallas_call(
        _lmatmul_kernel,
        out_shape=jax.ShapeDtypeStruct((G, So, Dp), out_dtype),
        grid=(G, Dp // TD),
        in_specs=[
            pl.BlockSpec((So, Sip), lambda g, d: (0, 0)),
            pl.BlockSpec((1, Sip, TD), lambda g, d: (g, 0, d)),
        ],
        out_specs=pl.BlockSpec((1, So, TD), lambda g, d: (g, 0, d)),
        compiler_params=pltpu.CompilerParams(
            dimension_semantics=("parallel", "parallel"),
            vmem_limit_bytes=VMEM_LIMIT),
    )(a_pad, xp)


# ----------------------------------------------------------------------------
# Kernel 3: fused bottleneck head.
#   3x3 conv (as 9 shifted accumulating dots over a zero-padded NHWC slab,
#   no im2col materialization) + folded BN + ReLU + 1x1 classifier conv.
#   grid = (batch,) — parallel across TensorCores on v7x.
# ----------------------------------------------------------------------------
def _bottleneck_head_kernel(x_ref, w3_ref, b3_ref, wc_ref, bc_ref, o_ref,
                            *, h, w):
    wp2 = w + 2
    L = h * wp2                                    # "wide" output rows
    cqp = w3_ref.shape[2]
    xv = x_ref[0]                                  # (P, Ccat) bf16, resident
    acc = jnp.zeros((L, cqp), jnp.float32)
    for t in range(9):                             # 3x3 taps, statically unrolled
        dy, dx = divmod(t, 3)
        sh = dy * wp2 + dx
        acc = acc + jnp.dot(xv[sh:sh + L, :], w3_ref[t],
                            preferred_element_type=jnp.float32)
    bott = jnp.maximum(acc + b3_ref[...], 0.0)     # BN folded + ReLU
    logits = jnp.dot(bott.astype(jnp.bfloat16), wc_ref[...],
                     preferred_element_type=jnp.float32) + bc_ref[...]
    o_ref[0] = logits


def bottleneck_head(cat_pad, w3_pad, b3_pad, wc_pad, bc_pad, h, w):
    B, P, Ccat = cat_pad.shape
    cqp = w3_pad.shape[2]
    ncp = wc_pad.shape[1]
    L = h * (w + 2)
    return pl.pallas_call(
        functools.partial(_bottleneck_head_kernel, h=h, w=w),
        out_shape=jax.ShapeDtypeStruct((B, L, ncp), jnp.float32),
        grid=(B,),
        in_specs=[
            pl.BlockSpec((1, P, Ccat), lambda b: (b, 0, 0)),
            pl.BlockSpec((9, Ccat, cqp), lambda b: (0, 0, 0)),
            pl.BlockSpec((1, cqp), lambda b: (0, 0)),
            pl.BlockSpec((cqp, ncp), lambda b: (0, 0)),
            pl.BlockSpec((1, ncp), lambda b: (0, 0)),
        ],
        out_specs=pl.BlockSpec((1, L, ncp), lambda b: (b, 0, 0)),
        compiler_params=pltpu.CompilerParams(
            dimension_semantics=("parallel",),
            vmem_limit_bytes=VMEM_LIMIT),
    )(cat_pad, w3_pad, b3_pad, wc_pad, bc_pad)


# ----------------------------------------------------------------------------
# Interpolation / pooling matrix builders (numpy, build-time only)
# ----------------------------------------------------------------------------
def adaptive_pool_matrix_1d(out_size, in_size):
    m = np.zeros((out_size, in_size), np.float32)
    for i in range(out_size):
        start = (i * in_size) // out_size
        end = -(-((i + 1) * in_size) // out_size)   # ceil
        m[i, start:end] = 1.0 / (end - start)
    return m


def bilinear_matrix_1d(out_size, in_size):
    """F.interpolate(mode='bilinear', align_corners=True) along one axis."""
    m = np.zeros((out_size, in_size), np.float32)
    if in_size == 1:
        m[:, 0] = 1.0
        return m
    if out_size == 1:
        m[0, 0] = 1.0
        return m
    src = np.arange(out_size, dtype=np.float64) * (in_size - 1) / (out_size - 1)
    lo = np.minimum(np.floor(src).astype(np.int64), in_size - 1)
    hi = np.minimum(lo + 1, in_size - 1)
    w_hi = (src - lo).astype(np.float32)
    for i in range(out_size):
        m[i, lo[i]] += 1.0 - w_hi[i]
        m[i, hi[i]] += w_hi[i]
    return m


def kaiming_normal(key, shape, fan_in):
    return jax.random.normal(key, shape, jnp.float32) * np.sqrt(2.0 / fan_in)


# ----------------------------------------------------------------------------
# Parameter construction: all constants pre-padded / pre-transposed / pre-cast.
# ----------------------------------------------------------------------------
def make_params(key, batch, in_h, in_w):
    C, Cq, nc = FEAT_CH, FEAT_CH // 4, NUM_CLASSES
    ns = 4 * Cq                           # concat width of the 4 stage outputs
    h, w = in_h // 8, in_w // 8
    hw = h * w
    Cp, NSp = _ru(C, 128), _ru(ns, 128)
    Cqp, ncp = _ru(Cq, 128), _ru(nc, 128)
    Ccat = Cp + NSp
    hwp = _ru(hw, 128)
    S = sum(ps * ps for ps in POOL_SIZES)          # 50 pooled positions
    Sp = _ru(S, 16)
    P = (h + 4) * (w + 2)                          # zero-padded conv slab rows

    keys = jax.random.split(key, 16)
    bn_scale = 1.0 / np.sqrt(1.0 + BN_EPS)         # eval BN: mean 0, var 1
    bn_bias = 1e-4                                 # initialize_weights()
    p = {}

    # --- stand-in backbone (TODO(synk): hgnetv2l unavailable) ----------------
    p["bb1_w"] = jax.random.normal(keys[0], (AUX_CH, 3, 3, 3), jnp.float32) * 0.1
    p["bb2_w"] = jax.random.normal(keys[1], (C, AUX_CH, 3, 3), jnp.float32) * 0.1

    # --- pyramid pooling + per-stage upsample operators ----------------------
    offs = np.cumsum([0] + [ps * ps for ps in POOL_SIZES])
    pool_all = np.zeros((Sp, hwp), np.float32)     # all 4 adaptive pools stacked
    u_conv = np.zeros((P, Sp), np.float32)         # upsample -> padded conv slab
    for j, ps in enumerate(POOL_SIZES):
        pool_all[offs[j]:offs[j + 1], :hw] = np.kron(
            adaptive_pool_matrix_1d(ps, h), adaptive_pool_matrix_1d(ps, w))
        uj = np.kron(bilinear_matrix_1d(h, ps), bilinear_matrix_1d(w, ps))
        for y in range(h):
            for x_ in range(w):
                r = (y + 1) * (w + 2) + (x_ + 1)   # interior pixel in padded slab
                u_conv[r, offs[j]:offs[j + 1]] = uj[y * w + x_]
    p["pool_all"] = jnp.asarray(pool_all, jnp.bfloat16)
    p["u_conv"] = jnp.asarray(u_conv, jnp.bfloat16)

    # --- ganged 1x1 stage convs (BN scale folded into the weights) -----------
    w_st = np.zeros((Cp, NSp), np.float32)
    for j, _ in enumerate(POOL_SIZES):
        wj = np.asarray(kaiming_normal(keys[2 + j], (Cq, C), fan_in=C))
        w_st[:C, j * Cq:(j + 1) * Cq] = wj.T * bn_scale
    p["w_stages"] = jnp.asarray(w_st, jnp.bfloat16)
    b_st = np.zeros((1, NSp), np.float32)
    b_st[0, :ns] = bn_bias
    p["b_stages"] = jnp.asarray(b_st)

    # Mask selecting, for each pooled row, its own stage's output channels
    # (also zeroes the padded rows / columns).  Matches the GEMM's (Mp, Np).
    mask = np.zeros((_gemm_m_pad(batch * Sp), NSp), np.float32)
    for b in range(batch):
        for j, _ in enumerate(POOL_SIZES):
            mask[b * Sp + offs[j]: b * Sp + offs[j + 1],
                 j * Cq:(j + 1) * Cq] = 1.0
    p["stage_mask"] = jnp.asarray(mask)

    # --- bottleneck 3x3 conv (BN folded), laid out as 9 (Ccat, Cqp) taps -----
    w3 = np.asarray(kaiming_normal(keys[6], (Cq, 2 * C, 3, 3), fan_in=2 * C * 9))
    w3p = np.zeros((9, Ccat, Cqp), np.float32)
    for t in range(9):
        ky, kx = divmod(t, 3)
        w3p[t, :C, :Cq] = w3[:, :C, ky, kx].T * bn_scale          # feat channels
        w3p[t, Cp:Cp + ns, :Cq] = w3[:, C:, ky, kx].T * bn_scale  # stage channels
    p["w3"] = jnp.asarray(w3p, jnp.bfloat16)
    b3 = np.zeros((1, Cqp), np.float32)
    b3[0, :Cq] = bn_bias
    p["b3"] = jnp.asarray(b3)

    # --- classifier 1x1 conv (kaiming weight, default PyTorch bias init) -----
    wc = np.asarray(kaiming_normal(keys[7], (nc, Cq), fan_in=Cq))
    wcp = np.zeros((Cqp, ncp), np.float32)
    wcp[:Cq, :nc] = wc.T
    p["wc"] = jnp.asarray(wcp, jnp.bfloat16)
    bound = 1.0 / np.sqrt(Cq)
    bc = np.zeros((1, ncp), np.float32)
    bc[0, :nc] = np.asarray(jax.random.uniform(
        keys[8], (nc,), jnp.float32, minval=-bound, maxval=bound))
    p["bc"] = jnp.asarray(bc)

    # --- separable final bilinear upsample (align_corners=True) --------------
    fh = np.zeros((in_h, _ru(h, 128)), np.float32)
    fh[:, :h] = bilinear_matrix_1d(in_h, h)
    fw = np.zeros((in_w, _ru(w, 128)), np.float32)
    fw[:, :w] = bilinear_matrix_1d(in_w, w)
    p["up_h"] = jnp.asarray(fh, jnp.bfloat16)
    p["up_w"] = jnp.asarray(fw, jnp.bfloat16)
    return p


# ----------------------------------------------------------------------------
# Forward pass (aux_branch=False)
# ----------------------------------------------------------------------------
def psp_forward(x, params):
    B, _, H, W = x.shape
    h, w = H // 8, W // 8
    hw = h * w
    nc = NUM_CLASSES
    dn = ("NCHW", "OIHW", "NCHW")

    # stand-in backbone: /4 then /8  (TODO(synk): hgnetv2l not provided)
    x_aux = jax.nn.relu(lax.conv_general_dilated(
        x, params["bb1_w"], (4, 4), ((1, 1), (1, 1)), dimension_numbers=dn))
    feat = jax.nn.relu(lax.conv_general_dilated(
        x_aux, params["bb2_w"], (2, 2), ((1, 1), (1, 1)), dimension_numbers=dn))

    C = feat.shape[1]
    Cp = params["w_stages"].shape[0]
    NSp = params["w_stages"].shape[1]
    Sp = params["pool_all"].shape[0]

    # NHWC, channel-padded once, bf16 for the MXU.
    feat_cp = jnp.pad(feat.transpose(0, 2, 3, 1).astype(jnp.bfloat16),
                      ((0, 0), (0, 0), (0, 0), (0, Cp - C)))        # (B,h,w,Cp)

    # (1) all four adaptive average pools in one batched matmul.
    pooled = batched_lmatmul(params["pool_all"],
                             feat_cp.reshape(B, hw, Cp))            # (B,Sp,Cp)

    # (2) ganged 1x1 stage convs + folded BN + ReLU + stage mask in one GEMM.
    stages = gemm_bias_act(pooled.reshape(B * Sp, Cp), params["w_stages"],
                           params["b_stages"], mask_pad=params["stage_mask"],
                           relu=True, out_dtype=jnp.bfloat16)       # (B*Sp,NSp)

    # (3) bilinear upsample of all stages back to (h,w), written directly into
    #     the zero-padded spatial layout the 3x3 conv reads.
    stage_sp = batched_lmatmul(params["u_conv"],
                               stages.reshape(B, Sp, NSp))          # (B,P,NSp)

    # (4) concat [features, stage outputs] in padded-channel NHWC layout.
    feat_sp = jnp.pad(feat_cp, ((0, 0), (1, 3), (1, 1), (0, 0)))
    feat_sp = feat_sp.reshape(B, -1, Cp)                            # (B,P,Cp)
    cat_sp = jnp.concatenate([feat_sp, stage_sp], axis=-1)          # (B,P,Ccat)

    # (5) fused bottleneck 3x3 conv + BN + ReLU (+Dropout2d eval = identity)
    #     + final 1x1 classifier conv.
    logits_wide = bottleneck_head(cat_sp, params["w3"], params["b3"],
                                  params["wc"], params["bc"], h, w)
    logits = logits_wide.reshape(B, h, w + 2, -1)[:, :, :w, :nc]    # (B,h,w,nc)

    # (6) final bilinear upsample to the input resolution, separable H then W.
    t1 = batched_lmatmul(params["up_h"], logits.reshape(B, h, w * nc),
                         out_dtype=jnp.bfloat16)                    # (B,H,·)
    t1 = t1[:, :H, :w * nc].reshape(B, H, w, nc).transpose(0, 2, 1, 3)
    t2 = batched_lmatmul(params["up_w"], t1.reshape(B, w, H * nc),
                         out_dtype=jnp.float32)                     # (B,W,·)
    out = t2[:, :W, :H * nc].reshape(B, W, H, nc).transpose(0, 3, 2, 1)
    return out                                                      # (B,nc,H,W)


# ----------------------------------------------------------------------------
if __name__ == "__main__":
    key = jax.random.PRNGKey(0)
    k_in, k_par = jax.random.split(key)

    B, Cin, H, W = 2, 3, 48, 48
    x = jax.random.normal(k_in, (B, Cin, H, W), jnp.float32)
    params = make_params(k_par, B, H, W)

    fwd = jax.jit(psp_forward)
    out = fwd(x, params)
    jax.block_until_ready(out)

    assert out.shape == (B, NUM_CLASSES, H, W), out.shape
    assert jnp.all(jnp.isfinite(out))
    print("KERNEL_OK")
</pallas_src>

<mosaic_0001>
module attributes {stable_mosaic.version = 11 : i64} {
  func.func @_lmatmul_kernel(%arg0: i32, %arg1: i32, %arg2: memref<64x128xbf16, #tpu.memory_space<vmem>>, %arg3: memref<1x128x128xbf16, #tpu.memory_space<vmem>>, %arg4: memref<1x64x128xbf16, #tpu.memory_space<vmem>>) attributes {dimension_semantics = [#tpu.dimension_semantics<parallel>, #tpu.dimension_semantics<parallel>], iteration_bounds = array<i64: 2, 1>, scalar_prefetch = 0 : i64, scratch_operands = 0 : i64, tpu.core_type = #tpu.core_type<tc>, window_params = [{pipeline_mode = #tpu.pipeline_mode<synchronous>, transform_indices = @transform_0, window_bounds = array<i64: 64, 128>}, {transform_indices = @transform_1, window_bounds = array<i64: 1, 128, 128>}, {transform_indices = @transform_2, window_bounds = array<i64: 1, 64, 128>}]} {
    %c0 = arith.constant 0 : index
    %c0_0 = arith.constant 0 : index
    %0 = vector.load %arg2[%c0, %c0_0] : memref<64x128xbf16, #tpu.memory_space<vmem>>, vector<64x128xbf16>
    %c0_1 = arith.constant 0 : index
    %c0_2 = arith.constant 0 : index
    %c0_3 = arith.constant 0 : index
    %1 = vector.load %arg3[%c0_1, %c0_2, %c0_3] : memref<1x128x128xbf16, #tpu.memory_space<vmem>>, vector<1x128x128xbf16>
    %2 = vector.shape_cast %1 : vector<1x128x128xbf16> to vector<128x128xbf16>
    %cst = arith.constant dense<0.000000e+00> : vector<64x128xf32>
    %3 = tpu.matmul %0, %2, %cst {dimension_numbers = #tpu.dot_dimension_numbers<[1], [0], [0], [1], [0, 0, 1, 1], [], []>} : vector<64x128xbf16>, vector<128x128xbf16>, vector<64x128xf32> -> vector<64x128xf32>
    %4 = arith.truncf %3 : vector<64x128xf32> to vector<64x128xbf16>
    %c0_4 = arith.constant 0 : index
    %c0_5 = arith.constant 0 : index
    %c0_6 = arith.constant 0 : index
    %5 = vector.load %arg4[%c0_4, %c0_5, %c0_6] : memref<1x64x128xbf16, #tpu.memory_space<vmem>>, vector<1x64x128xbf16>
    %6 = vector.shape_cast %5 : vector<1x64x128xbf16> to vector<64x128xbf16>
    %7 = vector.shape_cast %4 : vector<64x128xbf16> to vector<1x64x128xbf16>
    tpu.vector_store %arg4[%c0_4, %c0_5, %c0_6], %7 {strides = array<i32>} : memref<1x64x128xbf16, #tpu.memory_space<vmem>>, vector<1x64x128xbf16>,
    return
  }
  func.func @transform_0(%arg0: i32, %arg1: i32) -> (i32, i32) {
    %c0_i32 = arith.constant 0 : i32
    %c0_i32_0 = arith.constant 0 : i32
    %c0_i32_1 = arith.constant 0 : i32
    return %c0_i32, %c0_i32_0 : i32, i32
  }
  func.func @transform_1(%arg0: i32, %arg1: i32) -> (i32, i32, i32) {
    %c0_i32 = arith.constant 0 : i32
    %c0_i32_0 = arith.constant 0 : i32
    return %arg0, %c0_i32, %arg1 : i32, i32, i32
  }
  func.func @transform_2(%arg0: i32, %arg1: i32) -> (i32, i32, i32) {
    %c0_i32 = arith.constant 0 : i32
    %c0_i32_0 = arith.constant 0 : i32
    return %arg0, %c0_i32, %arg1 : i32, i32, i32
  }
}

module attributes {stable_mosaic.version = 11 : i64} {
  func.func @_lmatmul_kernel(%arg0: i32, %arg1: i32, %arg2: memref<80x64xbf16, #tpu.memory_space<vmem>>, %arg3: memref<1x64x128xbf16, #tpu.memory_space<vmem>>, %arg4: memref<1x80x128xbf16, #tpu.memory_space<vmem>>) attributes {dimension_semantics = [#tpu.dimension_semantics<parallel>, #tpu.dimension_semantics<parallel>], iteration_bounds = array<i64: 2, 1>, scalar_prefetch = 0 : i64, scratch_operands = 0 : i64, tpu.core_type = #tpu.core_type<tc>, window_params = [{pipeline_mode = #tpu.pipeline_mode<synchronous>, transform_indices = @transform_0, window_bounds = array<i64: 80, 64>}, {transform_indices = @transform_1, window_bounds = array<i64: 1, 64, 128>}, {transform_indices = @transform_2, window_bounds = array<i64: 1, 80, 128>}]} {
    %c0 = arith.constant 0 : index
    %c0_0 = arith.constant 0 : index
    %0 = vector.load %arg2[%c0, %c0_0] : memref<80x64xbf16, #tpu.memory_space<vmem>>, vector<80x64xbf16>
    %c0_1 = arith.constant 0 : index
    %c0_2 = arith.constant 0 : index
    %c0_3 = arith.constant 0 : index
    %1 = vector.load %arg3[%c0_1, %c0_2, %c0_3] : memref<1x64x128xbf16, #tpu.memory_space<vmem>>, vector<1x64x128xbf16>
    %2 = vector.shape_cast %1 : vector<1x64x128xbf16> to vector<64x128xbf16>
    %cst = arith.constant dense<0.000000e+00> : vector<80x128xf32>
    %3 = tpu.matmul %0, %2, %cst {dimension_numbers = #tpu.dot_dimension_numbers<[1], [0], [0], [1], [0, 0, 1, 1], [], []>} : vector<80x64xbf16>, vector<64x128xbf16>, vector<80x128xf32> -> vector<80x128xf32>
    %4 = arith.truncf %3 : vector<80x128xf32> to vector<80x128xbf16>
    %c0_4 = arith.constant 0 : index
    %c0_5 = arith.constant 0 : index
    %c0_6 = arith.constant 0 : index
    %5 = vector.load %arg4[%c0_4, %c0_5, %c0_6] : memref<1x80x128xbf16, #tpu.memory_space<vmem>>, vector<1x80x128xbf16>
    %6 = vector.shape_cast %5 : vector<1x80x128xbf16> to vector<80x128xbf16>
    %7 = vector.shape_cast %4 : vector<80x128xbf16> to vector<1x80x128xbf16>
    tpu.vector_store %arg4[%c0_4, %c0_5, %c0_6], %7 {strides = array<i32>} : memref<1x80x128xbf16, #tpu.memory_space<vmem>>, vector<1x80x128xbf16>,
    return
  }
  func.func @transform_0(%arg0: i32, %arg1: i32) -> (i32, i32) {
    %c0_i32 = arith.constant 0 : i32
    %c0_i32_0 = arith.constant 0 : i32
    %c0_i32_1 = arith.constant 0 : i32
    return %c0_i32, %c0_i32_0 : i32, i32
  }
  func.func @transform_1(%arg0: i32, %arg1: i32) -> (i32, i32, i32) {
    %c0_i32 = arith.constant 0 : i32
    %c0_i32_0 = arith.constant 0 : i32
    return %arg0, %c0_i32, %arg1 : i32, i32, i32
  }
  func.func @transform_2(%arg0: i32, %arg1: i32) -> (i32, i32, i32) {
    %c0_i32 = arith.constant 0 : i32
    %c0_i32_0 = arith.constant 0 : i32
    return %arg0, %c0_i32, %arg1 : i32, i32, i32
  }
}

module attributes {stable_mosaic.version = 11 : i64} {
  func.func @_gemm_kernel(%arg0: i32, %arg1: i32, %arg2: i32, %arg3: memref<128x128xbf16, #tpu.memory_space<vmem>>, %arg4: memref<128x128xbf16, #tpu.memory_space<vmem>>, %arg5: memref<1x128xf32, #tpu.memory_space<vmem>>, %arg6: memref<128x128xf32, #tpu.memory_space<vmem>>, %arg7: memref<128x128xbf16, #tpu.memory_space<vmem>>, %arg8: memref<128x128xf32, #tpu.memory_space<vmem>>) attributes {dimension_semantics = [#tpu.dimension_semantics<parallel>, #tpu.dimension_semantics<parallel>, #tpu.dimension_semantics<arbitrary>], iteration_bounds = array<i64: 1, 1, 1>, scalar_prefetch = 0 : i64, scratch_operands = 1 : i64, tpu.core_type = #tpu.core_type<tc>, window_params = [{transform_indices = @transform_0, window_bounds = array<i64: 128, 128>}, {transform_indices = @transform_1, window_bounds = array<i64: 128, 128>}, {transform_indices = @transform_2, window_bounds = array<i64: 1, 128>}, {transform_indices = @transform_3, window_bounds = array<i64: 128, 128>}, {transform_indices = @transform_4, window_bounds = array<i64: 128, 128>}]} {
    %c0_i32 = arith.constant 0 : i32
    %0 = arith.cmpi eq, %arg2, %c0_i32 : i32
    %1 = arith.extui %0 : i1 to i32
    %c0_i32_0 = arith.constant 0 : i32
    %2 = arith.cmpi ne, %1, %c0_i32_0 : i32
    scf.if %2 {
      %cst_10 = arith.constant 0.000000e+00 : f32
      %12 = vector.broadcast %cst_10 : f32 to vector<128x128xf32>
      %c0_11 = arith.constant 0 : index
      %c0_12 = arith.constant 0 : index
      %13 = vector.load %arg8[%c0_11, %c0_12] : memref<128x128xf32, #tpu.memory_space<vmem>>, vector<128x128xf32>
      tpu.vector_store %arg8[%c0_11, %c0_12], %12 {strides = array<i32>} : memref<128x128xf32, #tpu.memory_space<vmem>>, vector<128x128xf32>,
    } else {
    }
    %c0 = arith.constant 0 : index
    %c0_1 = arith.constant 0 : index
    %3 = vector.load %arg8[%c0, %c0_1] : memref<128x128xf32, #tpu.memory_space<vmem>>, vector<128x128xf32>
    %c0_2 = arith.constant 0 : index
    %c0_3 = arith.constant 0 : index
    %4 = vector.load %arg3[%c0_2, %c0_3] : memref<128x128xbf16, #tpu.memory_space<vmem>>, vector<128x128xbf16>
    %c0_4 = arith.constant 0 : index
    %c0_5 = arith.constant 0 : index
    %5 = vector.load %arg4[%c0_4, %c0_5] : memref<128x128xbf16, #tpu.memory_space<vmem>>, vector<128x128xbf16>
    %cst = arith.constant dense<0.000000e+00> : vector<128x128xf32>
    %6 = tpu.matmul %4, %5, %cst {dimension_numbers = #tpu.dot_dimension_numbers<[1], [0], [0], [1], [0, 0, 1, 1], [], []>} : vector<128x128xbf16>, vector<128x128xbf16>, vector<128x128xf32> -> vector<128x128xf32>
    %7 = arith.addf %3, %6 : vector<128x128xf32>
    %c0_6 = arith.constant 0 : index
    %c0_7 = arith.constant 0 : index
    %8 = vector.load %arg8[%c0_6, %c0_7] : memref<128x128xf32, #tpu.memory_space<vmem>>, vector<128x128xf32>
    tpu.vector_store %arg8[%c0_6, %c0_7], %7 {strides = array<i32>} : memref<128x128xf32, #tpu.memory_space<vmem>>, vector<128x128xf32>,
    %c0_i32_8 = arith.constant 0 : i32
    %9 = arith.cmpi eq, %arg2, %c0_i32_8 : i32
    %10 = arith.extui %9 : i1 to i32
    %c0_i32_9 = arith.constant 0 : i32
    %11 = arith.cmpi ne, %10, %c0_i32_9 : i32
    scf.if %11 {
      %c0_10 = arith.constant 0 : index
      %c0_11 = arith.constant 0 : index
      %12 = vector.load %arg8[%c0_10, %c0_11] : memref<128x128xf32, #tpu.memory_space<vmem>>, vector<128x128xf32>
      %c0_12 = arith.constant 0 : index
      %c0_13 = arith.constant 0 : index
      %13 = vector.load %arg5[%c0_12, %c0_13] : memref<1x128xf32, #tpu.memory_space<vmem>>, vector<1x128xf32>
      %14 = vector.broadcast %13 : vector<1x128xf32> to vector<128x128xf32>
      %15 = arith.addf %12, %14 : vector<128x128xf32>
      %cst_14 = arith.constant 0.000000e+00 : f32
      %16 = vector.broadcast %cst_14 : f32 to vector<128x128xf32>
      %17 = arith.maximumf %15, %16 : vector<128x128xf32>
      %c0_15 = arith.constant 0 : index
      %c0_16 = arith.constant 0 : index
      %18 = vector.load %arg6[%c0_15, %c0_16] : memref<128x128xf32, #tpu.memory_space<vmem>>, vector<128x128xf32>
      %19 = arith.mulf %17, %18 : vector<128x128xf32>
      %20 = arith.truncf %19 : vector<128x128xf32> to vector<128x128xbf16>
      %c0_17 = arith.constant 0 : index
      %c0_18 = arith.constant 0 : index
      %21 = vector.load %arg7[%c0_17, %c0_18] : memref<128x128xbf16, #tpu.memory_space<vmem>>, vector<128x128xbf16>
      tpu.vector_store %arg7[%c0_17, %c0_18], %20 {strides = array<i32>} : memref<128x128xbf16, #tpu.memory_space<vmem>>, vector<128x128xbf16>,
    } else {
    }
    return
  }
  func.func @transform_0(%arg0: i32, %arg1: i32, %arg2: i32) -> (i32, i32) {
    %c0_i32 = arith.constant 0 : i32
    return %arg0, %arg2 : i32, i32
  }
  func.func @transform_1(%arg0: i32, %arg1: i32, %arg2: i32) -> (i32, i32) {
    %c0_i32 = arith.constant 0 : i32
    return %arg2, %arg1 : i32, i32
  }
  func.func @transform_2(%arg0: i32, %arg1: i32, %arg2: i32) -> (i32, i32) {
    %c0_i32 = arith.constant 0 : i32
    %c0_i32_0 = arith.constant 0 : i32
    return %c0_i32, %arg1 : i32, i32
  }
  func.func @transform_3(%arg0: i32, %arg1: i32, %arg2: i32) -> (i32, i32) {
    %c0_i32 = arith.constant 0 : i32
    return %arg0, %arg1 : i32, i32
  }
  func.func @transform_4(%arg0: i32, %arg1: i32, %arg2: i32) -> (i32, i32) {
    %c0_i32 = arith.constant 0 : i32
    return %arg0, %arg1 : i32, i32
  }
}

module attributes {stable_mosaic.version = 11 : i64} {
  func.func @_bottleneck_head_kernel(%arg0: i32, %arg1: memref<1x80x256xbf16, #tpu.memory_space<vmem>>, %arg2: memref<9x256x128xbf16, #tpu.memory_space<vmem>>, %arg3: memref<1x128xf32, #tpu.memory_space<vmem>>, %arg4: memref<128x128xbf16, #tpu.memory_space<vmem>>, %arg5: memref<1x128xf32, #tpu.memory_space<vmem>>, %arg6: memref<1x48x128xf32, #tpu.memory_space<vmem>>) attributes {dimension_semantics = [#tpu.dimension_semantics<parallel>], iteration_bounds = array<i64: 2>, scalar_prefetch = 0 : i64, scratch_operands = 0 : i64, tpu.core_type = #tpu.core_type<tc>, window_params = [{transform_indices = @transform_0, window_bounds = array<i64: 1, 80, 256>}, {pipeline_mode = #tpu.pipeline_mode<synchronous>, transform_indices = @transform_1, window_bounds = array<i64: 9, 256, 128>}, {pipeline_mode = #tpu.pipeline_mode<synchronous>, transform_indices = @transform_2, window_bounds = array<i64: 1, 128>}, {pipeline_mode = #tpu.pipeline_mode<synchronous>, transform_indices = @transform_3, window_bounds = array<i64: 128, 128>}, {pipeline_mode = #tpu.pipeline_mode<synchronous>, transform_indices = @transform_4, window_bounds = array<i64: 1, 128>}, {transform_indices = @transform_5, window_bounds = array<i64: 1, 48, 128>}]} {
    %c0 = arith.constant 0 : index
    %c0_0 = arith.constant 0 : index
    %c0_1 = arith.constant 0 : index
    %0 = vector.load %arg1[%c0, %c0_0, %c0_1] : memref<1x80x256xbf16, #tpu.memory_space<vmem>>, vector<1x80x256xbf16>
    %1 = vector.shape_cast %0 : vector<1x80x256xbf16> to vector<80x256xbf16>
    %cst = arith.constant 0.000000e+00 : f32
    %2 = vector.broadcast %cst : f32 to vector<48x128xf32>
    %3 = vector.extract_strided_slice %1 {offsets = [0, 0], sizes = [48, 256], strides = [1, 1]} : vector<80x256xbf16> to vector<48x256xbf16>
    %c0_2 = arith.constant 0 : index
    %c0_3 = arith.constant 0 : index
    %c0_4 = arith.constant 0 : index
    %4 = vector.load %arg2[%c0_2, %c0_3, %c0_4] : memref<9x256x128xbf16, #tpu.memory_space<vmem>>, vector<1x256x128xbf16>
    %5 = vector.shape_cast %4 : vector<1x256x128xbf16> to vector<256x128xbf16>
    %cst_5 = arith.constant dense<0.000000e+00> : vector<48x128xf32>
    %6 = tpu.matmul %3, %5, %cst_5 {dimension_numbers = #tpu.dot_dimension_numbers<[1], [0], [0], [1], [0, 0, 1, 1], [], []>} : vector<48x256xbf16>, vector<256x128xbf16>, vector<48x128xf32> -> vector<48x128xf32>
    %7 = arith.addf %2, %6 : vector<48x128xf32>
    %8 = vector.extract_strided_slice %1 {offsets = [1, 0], sizes = [48, 256], strides = [1, 1]} : vector<80x256xbf16> to vector<48x256xbf16>
    %c1 = arith.constant 1 : index
    %c0_6 = arith.constant 0 : index
    %c0_7 = arith.constant 0 : index
    %9 = vector.load %arg2[%c1, %c0_6, %c0_7] : memref<9x256x128xbf16, #tpu.memory_space<vmem>>, vector<1x256x128xbf16>
    %10 = vector.shape_cast %9 : vector<1x256x128xbf16> to vector<256x128xbf16>
    %cst_8 = arith.constant dense<0.000000e+00> : vector<48x128xf32>
    %11 = tpu.matmul %8, %10, %cst_8 {dimension_numbers = #tpu.dot_dimension_numbers<[1], [0], [0], [1], [0, 0, 1, 1], [], []>} : vector<48x256xbf16>, vector<256x128xbf16>, vector<48x128xf32> -> vector<48x128xf32>
    %12 = arith.addf %7, %11 : vector<48x128xf32>
    %13 = vector.extract_strided_slice %1 {offsets = [2, 0], sizes = [48, 256], strides = [1, 1]} : vector<80x256xbf16> to vector<48x256xbf16>
    %c2 = arith.constant 2 : index
    %c0_9 = arith.constant 0 : index
    %c0_10 = arith.constant 0 : index
    %14 = vector.load %arg2[%c2, %c0_9, %c0_10] : memref<9x256x128xbf16, #tpu.memory_space<vmem>>, vector<1x256x128xbf16>
    %15 = vector.shape_cast %14 : vector<1x256x128xbf16> to vector<256x128xbf16>
    %cst_11 = arith.constant dense<0.000000e+00> : vector<48x128xf32>
    %16 = tpu.matmul %13, %15, %cst_11 {dimension_numbers = #tpu.dot_dimension_numbers<[1], [0], [0], [1], [0, 0, 1, 1], [], []>} : vector<48x256xbf16>, vector<256x128xbf16>, vector<48x128xf32> -> vector<48x128xf32>
    %17 = arith.addf %12, %16 : vector<48x128xf32>
    %18 = vector.extract_strided_slice %1 {offsets = [8, 0], sizes = [48, 256], strides = [1, 1]} : vector<80x256xbf16> to vector<48x256xbf16>
    %c3 = arith.constant 3 : index
    %c0_12 = arith.constant 0 : index
    %c0_13 = arith.constant 0 : index
    %19 = vector.load %arg2[%c3, %c0_12, %c0_13] : memref<9x256x128xbf16, #tpu.memory_space<vmem>>, vector<1x256x128xbf16>
    %20 = vector.shape_cast %19 : vector<1x256x128xbf16> to vector<256x128xbf16>
    %cst_14 = arith.constant dense<0.000000e+00> : vector<48x128xf32>
    %21 = tpu.matmul %18, %20, %cst_14 {dimension_numbers = #tpu.dot_dimension_numbers<[1], [0], [0], [1], [0, 0, 1, 1], [], []>} : vector<48x256xbf16>, vector<256x128xbf16>, vector<48x128xf32> -> vector<48x128xf32>
    %22 = arith.addf %17, %21 : vector<48x128xf32>
    %23 = vector.extract_strided_slice %1 {offsets = [9, 0], sizes = [48, 256], strides = [1, 1]} : vector<80x256xbf16> to vector<48x256xbf16>
    %c4 = arith.constant 4 : index
    %c0_15 = arith.constant 0 : index
    %c0_16 = arith.constant 0 : index
    %24 = vector.load %arg2[%c4, %c0_15, %c0_16] : memref<9x256x128xbf16, #tpu.memory_space<vmem>>, vector<1x256x128xbf16>
    %25 = vector.shape_cast %24 : vector<1x256x128xbf16> to vector<256x128xbf16>
    %cst_17 = arith.constant dense<0.000000e+00> : vector<48x128xf32>
    %26 = tpu.matmul %23, %25, %cst_17 {dimension_numbers = #tpu.dot_dimension_numbers<[1], [0], [0], [1], [0, 0, 1, 1], [], []>} : vector<48x256xbf16>, vector<256x128xbf16>, vector<48x128xf32> -> vector<48x128xf32>
    %27 = arith.addf %22, %26 : vector<48x128xf32>
    %28 = vector.extract_strided_slice %1 {offsets = [10, 0], sizes = [48, 256], strides = [1, 1]} : vector<80x256xbf16> to vector<48x256xbf16>
    %c5 = arith.constant 5 : index
    %c0_18 = arith.constant 0 : index
    %c0_19 = arith.constant 0 : index
    %29 = vector.load %arg2[%c5, %c0_18, %c0_19] : memref<9x256x128xbf16, #tpu.memory_space<vmem>>, vector<1x256x128xbf16>
    %30 = vector.shape_cast %29 : vector<1x256x128xbf16> to vector<256x128xbf16>
    %cst_20 = arith.constant dense<0.000000e+00> : vector<48x128xf32>
    %31 = tpu.matmul %28, %30, %cst_20 {dimension_numbers = #tpu.dot_dimension_numbers<[1], [0], [0], [1], [0, 0, 1, 1], [], []>} : vector<48x256xbf16>, vector<256x128xbf16>, vector<48x128xf32> -> vector<48x128xf32>
    %32 = arith.addf %27, %31 : vector<48x128xf32>
    %33 = vector.extract_strided_slice %1 {offsets = [16, 0], sizes = [48, 256], strides = [1, 1]} : vector<80x256xbf16> to vector<48x256xbf16>
    %c6 = arith.constant 6 : index
    %c0_21 = arith.constant 0 : index
    %c0_22 = arith.constant 0 : index
    %34 = vector.load %arg2[%c6, %c0_21, %c0_22] : memref<9x256x128xbf16, #tpu.memory_space<vmem>>, vector<1x256x128xbf16>
    %35 = vector.shape_cast %34 : vector<1x256x128xbf16> to vector<256x128xbf16>
    %cst_23 = arith.constant dense<0.000000e+00> : vector<48x128xf32>
    %36 = tpu.matmul %33, %35, %cst_23 {dimension_numbers = #tpu.dot_dimension_numbers<[1], [0], [0], [1], [0, 0, 1, 1], [], []>} : vector<48x256xbf16>, vector<256x128xbf16>, vector<48x128xf32> -> vector<48x128xf32>
    %37 = arith.addf %32, %36 : vector<48x128xf32>
    %38 = vector.extract_strided_slice %1 {offsets = [17, 0], sizes = [48, 256], strides = [1, 1]} : vector<80x256xbf16> to vector<48x256xbf16>
    %c7 = arith.constant 7 : index
    %c0_24 = arith.constant 0 : index
    %c0_25 = arith.constant 0 : index
    %39 = vector.load %arg2[%c7, %c0_24, %c0_25] : memref<9x256x128xbf16, #tpu.memory_space<vmem>>, vector<1x256x128xbf16>
    %40 = vector.shape_cast %39 : vector<1x256x128xbf16> to vector<256x128xbf16>
    %cst_26 = arith.constant dense<0.000000e+00> : vector<48x128xf32>
    %41 = tpu.matmul %38, %40, %cst_26 {dimension_numbers = #tpu.dot_dimension_numbers<[1], [0], [0], [1], [0, 0, 1, 1], [], []>} : vector<48x256xbf16>, vector<256x128xbf16>, vector<48x128xf32> -> vector<48x128xf32>
    %42 = arith.addf %37, %41 : vector<48x128xf32>
    %43 = vector.extract_strided_slice %1 {offsets = [18, 0], sizes = [48, 256], strides = [1, 1]} : vector<80x256xbf16> to vector<48x256xbf16>
    %c8 = arith.constant 8 : index
    %c0_27 = arith.constant 0 : index
    %c0_28 = arith.constant 0 : index
    %44 = vector.load %arg2[%c8, %c0_27, %c0_28] : memref<9x256x128xbf16, #tpu.memory_space<vmem>>, vector<1x256x128xbf16>
    %45 = vector.shape_cast %44 : vector<1x256x128xbf16> to vector<256x128xbf16>
    %cst_29 = arith.constant dense<0.000000e+00> : vector<48x128xf32>
    %46 = tpu.matmul %43, %45, %cst_29 {dimension_numbers = #tpu.dot_dimension_numbers<[1], [0], [0], [1], [0, 0, 1, 1], [], []>} : vector<48x256xbf16>, vector<256x128xbf16>, vector<48x128xf32> -> vector<48x128xf32>
    %47 = arith.addf %42, %46 : vector<48x128xf32>
    %c0_30 = arith.constant 0 : index
    %c0_31 = arith.constant 0 : index
    %48 = vector.load %arg3[%c0_30, %c0_31] : memref<1x128xf32, #tpu.memory_space<vmem>>, vector<1x128xf32>
    %49 = vector.broadcast %48 : vector<1x128xf32> to vector<48x128xf32>
    %50 = arith.addf %47, %49 : vector<48x128xf32>
    %cst_32 = arith.constant 0.000000e+00 : f32
    %51 = vector.broadcast %cst_32 : f32 to vector<48x128xf32>
    %52 = arith.maximumf %50, %51 : vector<48x128xf32>
    %53 = arith.truncf %52 : vector<48x128xf32> to vector<48x128xbf16>
    %c0_33 = arith.constant 0 : index
    %c0_34 = arith.constant 0 : index
    %54 = vector.load %arg4[%c0_33, %c0_34] : memref<128x128xbf16, #tpu.memory_space<vmem>>, vector<128x128xbf16>
    %cst_35 = arith.constant dense<0.000000e+00> : vector<48x128xf32>
    %55 = tpu.matmul %53, %54, %cst_35 {dimension_numbers = #tpu.dot_dimension_numbers<[1], [0], [0], [1], [0, 0, 1, 1], [], []>} : vector<48x128xbf16>, vector<128x128xbf16>, vector<48x128xf32> -> vector<48x128xf32>
    %c0_36 = arith.constant 0 : index
    %c0_37 = arith.constant 0 : index
    %56 = vector.load %arg5[%c0_36, %c0_37] : memref<1x128xf32, #tpu.memory_space<vmem>>, vector<1x128xf32>
    %57 = vector.broadcast %56 : vector<1x128xf32> to vector<48x128xf32>
    %58 = arith.addf %55, %57 : vector<48x128xf32>
    %c0_38 = arith.constant 0 : index
    %c0_39 = arith.constant 0 : index
    %c0_40 = arith.constant 0 : index
    %59 = vector.load %arg6[%c0_38, %c0_39, %c0_40] : memref<1x48x128xf32, #tpu.memory_space<vmem>>, vector<1x48x128xf32>
    %60 = vector.shape_cast %59 : vector<1x48x128xf32> to vector<48x128xf32>
    %61 = vector.shape_cast %58 : vector<48x128xf32> to vector<1x48x128xf32>
    tpu.vector_store %arg6[%c0_38, %c0_39, %c0_40], %61 {strides = array<i32>} : memref<1x48x128xf32, #tpu.memory_space<vmem>>, vector<1x48x128xf32>,
    return
  }
  func.func @transform_0(%arg0: i32) -> (i32, i32, i32) {
    %c0_i32 = arith.constant 0 : i32
    %c0_i32_0 = arith.constant 0 : i32
    %c0_i32_1 = arith.constant 0 : i32
    return %arg0, %c0_i32, %c0_i32_0 : i32, i32, i32
  }
  func.func @transform_1(%arg0: i32) -> (i32, i32, i32) {
    %c0_i32 = arith.constant 0 : i32
    %c0_i32_0 = arith.constant 0 : i32
    %c0_i32_1 = arith.constant 0 : i32
    %c0_i32_2 = arith.constant 0 : i32
    return %c0_i32, %c0_i32_0, %c0_i32_1 : i32, i32, i32
  }
  func.func @transform_2(%arg0: i32) -> (i32, i32) {
    %c0_i32 = arith.constant 0 : i32
    %c0_i32_0 = arith.constant 0 : i32
    %c0_i32_1 = arith.constant 0 : i32
    return %c0_i32, %c0_i32_0 : i32, i32
  }
  func.func @transform_3(%arg0: i32) -> (i32, i32) {
    %c0_i32 = arith.constant 0 : i32
    %c0_i32_0 = arith.constant 0 : i32
    %c0_i32_1 = arith.constant 0 : i32
    return %c0_i32, %c0_i32_0 : i32, i32
  }
  func.func @transform_4(%arg0: i32) -> (i32, i32) {
    %c0_i32 = arith.constant 0 : i32
    %c0_i32_0 = arith.constant 0 : i32
    %c0_i32_1 = arith.constant 0 : i32
    return %c0_i32, %c0_i32_0 : i32, i32
  }
  func.func @transform_5(%arg0: i32) -> (i32, i32, i32) {
    %c0_i32 = arith.constant 0 : i32
    %c0_i32_0 = arith.constant 0 : i32
    %c0_i32_1 = arith.constant 0 : i32
    return %arg0, %c0_i32, %c0_i32_0 : i32, i32, i32
  }
}

module attributes {stable_mosaic.version = 11 : i64} {
  func.func @_lmatmul_kernel(%arg0: i32, %arg1: i32, %arg2: memref<48x128xbf16, #tpu.memory_space<vmem>>, %arg3: memref<1x128x128xbf16, #tpu.memory_space<vmem>>, %arg4: memref<1x48x128xbf16, #tpu.memory_space<vmem>>) attributes {dimension_semantics = [#tpu.dimension_semantics<parallel>, #tpu.dimension_semantics<parallel>], iteration_bounds = array<i64: 2, 1>, scalar_prefetch = 0 : i64, scratch_operands = 0 : i64, tpu.core_type = #tpu.core_type<tc>, window_params = [{pipeline_mode = #tpu.pipeline_mode<synchronous>, transform_indices = @transform_0, window_bounds = array<i64: 48, 128>}, {transform_indices = @transform_1, window_bounds = array<i64: 1, 128, 128>}, {transform_indices = @transform_2, window_bounds = array<i64: 1, 48, 128>}]} {
    %c0 = arith.constant 0 : index
    %c0_0 = arith.constant 0 : index
    %0 = vector.load %arg2[%c0, %c0_0] : memref<48x128xbf16, #tpu.memory_space<vmem>>, vector<48x128xbf16>
    %c0_1 = arith.constant 0 : index
    %c0_2 = arith.constant 0 : index
    %c0_3 = arith.constant 0 : index
    %1 = vector.load %arg3[%c0_1, %c0_2, %c0_3] : memref<1x128x128xbf16, #tpu.memory_space<vmem>>, vector<1x128x128xbf16>
    %2 = vector.shape_cast %1 : vector<1x128x128xbf16> to vector<128x128xbf16>
    %cst = arith.constant dense<0.000000e+00> : vector<48x128xf32>
    %3 = tpu.matmul %0, %2, %cst {dimension_numbers = #tpu.dot_dimension_numbers<[1], [0], [0], [1], [0, 0, 1, 1], [], []>} : vector<48x128xbf16>, vector<128x128xbf16>, vector<48x128xf32> -> vector<48x128xf32>
    %4 = arith.truncf %3 : vector<48x128xf32> to vector<48x128xbf16>
    %c0_4 = arith.constant 0 : index
    %c0_5 = arith.constant 0 : index
    %c0_6 = arith.constant 0 : index
    %5 = vector.load %arg4[%c0_4, %c0_5, %c0_6] : memref<1x48x128xbf16, #tpu.memory_space<vmem>>, vector<1x48x128xbf16>
    %6 = vector.shape_cast %5 : vector<1x48x128xbf16> to vector<48x128xbf16>
    %7 = vector.shape_cast %4 : vector<48x128xbf16> to vector<1x48x128xbf16>
    tpu.vector_store %arg4[%c0_4, %c0_5, %c0_6], %7 {strides = array<i32>} : memref<1x48x128xbf16, #tpu.memory_space<vmem>>, vector<1x48x128xbf16>,
    return
  }
  func.func @transform_0(%arg0: i32, %arg1: i32) -> (i32, i32) {
    %c0_i32 = arith.constant 0 : i32
    %c0_i32_0 = arith.constant 0 : i32
    %c0_i32_1 = arith.constant 0 : i32
    return %c0_i32, %c0_i32_0 : i32, i32
  }
  func.func @transform_1(%arg0: i32, %arg1: i32) -> (i32, i32, i32) {
    %c0_i32 = arith.constant 0 : i32
    %c0_i32_0 = arith.constant 0 : i32
    return %arg0, %c0_i32, %arg1 : i32, i32, i32
  }
  func.func @transform_2(%arg0: i32, %arg1: i32) -> (i32, i32, i32) {
    %c0_i32 = arith.constant 0 : i32
    %c0_i32_0 = arith.constant 0 : i32
    return %arg0, %c0_i32, %arg1 : i32, i32, i32
  }
}

module attributes {stable_mosaic.version = 11 : i64} {
  func.func @_lmatmul_kernel(%arg0: i32, %arg1: i32, %arg2: memref<48x128xbf16, #tpu.memory_space<vmem>>, %arg3: memref<1x128x256xbf16, #tpu.memory_space<vmem>>, %arg4: memref<1x48x256xf32, #tpu.memory_space<vmem>>) attributes {dimension_semantics = [#tpu.dimension_semantics<parallel>, #tpu.dimension_semantics<parallel>], iteration_bounds = array<i64: 2, 1>, scalar_prefetch = 0 : i64, scratch_operands = 0 : i64, tpu.core_type = #tpu.core_type<tc>, window_params = [{pipeline_mode = #tpu.pipeline_mode<synchronous>, transform_indices = @transform_0, window_bounds = array<i64: 48, 128>}, {transform_indices = @transform_1, window_bounds = array<i64: 1, 128, 256>}, {transform_indices = @transform_2, window_bounds = array<i64: 1, 48, 256>}]} {
    %c0 = arith.constant 0 : index
    %c0_0 = arith.constant 0 : index
    %0 = vector.load %arg2[%c0, %c0_0] : memref<48x128xbf16, #tpu.memory_space<vmem>>, vector<48x128xbf16>
    %c0_1 = arith.constant 0 : index
    %c0_2 = arith.constant 0 : index
    %c0_3 = arith.constant 0 : index
    %1 = vector.load %arg3[%c0_1, %c0_2, %c0_3] : memref<1x128x256xbf16, #tpu.memory_space<vmem>>, vector<1x128x256xbf16>
    %2 = vector.shape_cast %1 : vector<1x128x256xbf16> to vector<128x256xbf16>
    %cst = arith.constant dense<0.000000e+00> : vector<48x256xf32>
    %3 = tpu.matmul %0, %2, %cst {dimension_numbers = #tpu.dot_dimension_numbers<[1], [0], [0], [1], [0, 0, 1, 1], [], []>} : vector<48x128xbf16>, vector<128x256xbf16>, vector<48x256xf32> -> vector<48x256xf32>
    %c0_4 = arith.constant 0 : index
    %c0_5 = arith.constant 0 : index
    %c0_6 = arith.constant 0 : index
    %4 = vector.load %arg4[%c0_4, %c0_5, %c0_6] : memref<1x48x256xf32, #tpu.memory_space<vmem>>, vector<1x48x256xf32>
    %5 = vector.shape_cast %4 : vector<1x48x256xf32> to vector<48x256xf32>
    %6 = vector.shape_cast %3 : vector<48x256xf32> to vector<1x48x256xf32>
    tpu.vector_store %arg4[%c0_4, %c0_5, %c0_6], %6 {strides = array<i32>} : memref<1x48x256xf32, #tpu.memory_space<vmem>>, vector<1x48x256xf32>,
    return
  }
  func.func @transform_0(%arg0: i32, %arg1: i32) -> (i32, i32) {
    %c0_i32 = arith.constant 0 : i32
    %c0_i32_0 = arith.constant 0 : i32
    %c0_i32_1 = arith.constant 0 : i32
    return %c0_i32, %c0_i32_0 : i32, i32
  }
  func.func @transform_1(%arg0: i32, %arg1: i32) -> (i32, i32, i32) {
    %c0_i32 = arith.constant 0 : i32
    %c0_i32_0 = arith.constant 0 : i32
    return %arg0, %c0_i32, %arg1 : i32, i32, i32
  }
  func.func @transform_2(%arg0: i32, %arg1: i32) -> (i32, i32, i32) {
    %c0_i32 = arith.constant 0 : i32
    %c0_i32_0 = arith.constant 0 : i32
    return %arg0, %c0_i32, %arg1 : i32, i32, i32
  }
}

</mosaic_0001>

<bundles_post_ra>
// kernel: psp_forward.6
= control target key start
LH: loop header
LB: loop body
LE: loop exit
PB: predicated region body
PF: predicated region fallthrough
CT: control target
= control target key end

     0   :  { %s651_s9 = smov 0   ;;  %s653_s10 = smov 0   ;;  %s710_s0 = inlined_call_operand.vmem [shape: bf16[64,128], index: 0, kind: input, shape index: {}]   ;;  %s711_s1 = inlined_call_operand.vmem [shape: bf16[2,128,128], index: 1, kind: input, shape index: {}]   ;;  %s712_s2 = inlined_call_operand.vmem [shape: bf16[2,64,128], index: 2, kind: output, shape index: {}]  }
   0x1   :  { %s655_s11 = smov 0  }
   0x2 LB: > { %s24_s12 = sadd.s32 1, %s630_s10  ;;  %p464_p0 = scmp.ge.s32.totalorder %s634_s11, 1  ;;  %s634_s11 = sphi %s655_s11, %s12_s11   ;;  %s630_s10 = sphi %s653_s10, %s714_s10   ;;  %s626_s9 = sphi %s651_s9, %s713_s9  }
   0x3   : > { %p26_p1 = scmp.ge.s32.totalorder %s24_s12, 2  ;;  %p131_p2 = scmp.lt.s32.totalorder %s634_s11, 3 }
   0x5   : > { %s716_s12 = smov (%p26_p1, %s24_s12), 0  ;;  %p132_p3 = pnand %p464_p0, %p131_p2 }
   0x6   : > { %p159_p4 = scmp.lt.s32.totalorder (!%p132_p3), %s626_s9, 1  ;;  %v608_v0 = vld [vmem:[%s710_s0] sm:$0xff] (!%p132_p3)   ;;  %v609_v1 = vld [vmem:[%s710_s0 + $0x10] sm:$0xff] (!%p132_p3)   ;;  %v610_v10 = vld [vmem:[%s710_s0 + $0x8] sm:$0xff] (!%p132_p3)  }
   0x7   : > { %135 = sbr.rel (%p132_p3) target bundleno = 268 (0x10c), region = 28  ;;  %552 = vmatprep.mubr.bf16.mxu0 (!%p132_p3), %v608_v0  ;;  %556 = vmatprep.mubr.bf16.mxu1 (!%p132_p3), %v609_v1  ;;  %v611_v11 = vld [vmem:[%s710_s0 + $0x18] sm:$0xff] (!%p132_p3)  }
   0xe   : > { %s718_s9 = smov (!%p159_p4, %s626_s9), 1 }
   0xf   : > { %s491_s17 = sshll.u32 %s718_s9, 6  ;;  %s492_s25 = sshll.u32 %s718_s9, 5 }
  0x10   : > { %s681_s20 = scalar_lea.vmem %s711_s1, %s491_s17  ;;  %s174_s28 = scalar_lea.vmem %s712_s2, %s492_s25 }
  0x11   : > { %v600_v2 = vld [vmem:[%s681_s20] sm:$0xff]   ;;  %v601_v3 = vld [vmem:[%s681_s20 + $0x8] sm:$0xff]   ;;  %v602_v4 = vld [vmem:[%s681_s20 + $0x10] sm:$0xff]  }
  0x12   : > { %536 = vmatprep.subr.bf16.mxu0 %v600_v2  ;;  %560 = vmatprep.subr.bf16.mxu1 %v600_v2  ;;  %v603_v5 = vld [vmem:[%s681_s20 + $0x18] sm:$0xff]   ;;  %v604_v6 = vld [vmem:[%s681_s20 + $0x20] sm:$0xff]   ;;  %v605_v7 = vld [vmem:[%s681_s20 + $0x28] sm:$0xff]  }
  0x13   : > { %537 = vmatpush3.bf16.msra.mxu0 %v600_v2  ;;  %568 = vmatpush3.bf16.msra.mxu1 %v600_v2  ;;  %v606_v8 = vld [vmem:[%s681_s20 + $0x30] sm:$0xff]   ;;  %v607_v9 = vld [vmem:[%s681_s20 + $0x38] sm:$0xff]  }
  0x14   : > { %538 = vmatprep.subr.bf16.mxu0 %v601_v3  ;;  %561 = vmatprep.subr.bf16.mxu1 %v601_v3 }
  0x17   : > { %539 = vmatpush3.bf16.msra.mxu0 %v601_v3  ;;  %569 = vmatpush3.bf16.msra.mxu1 %v601_v3 }
  0x18   : > { %540 = vmatprep.subr.bf16.mxu0 %v602_v4  ;;  %562 = vmatprep.subr.bf16.mxu1 %v602_v4 }
  0x1b   : > { %541 = vmatpush3.bf16.msra.mxu0 %v602_v4  ;;  %570 = vmatpush3.bf16.msra.mxu1 %v602_v4 }
  0x1c   : > { %542 = vmatprep.subr.bf16.mxu0 %v603_v5  ;;  %563 = vmatprep.subr.bf16.mxu1 %v603_v5 }
  0x1f   : > { %543 = vmatpush3.bf16.msra.mxu0 %v603_v5  ;;  %571 = vmatpush3.bf16.msra.mxu1 %v603_v5 }
  0x20   : > { %544 = vmatprep.subr.bf16.mxu0 %v604_v6  ;;  %564 = vmatprep.subr.bf16.mxu1 %v604_v6 }
  0x23   : > { %545 = vmatpush3.bf16.msra.mxu0 %v604_v6  ;;  %572 = vmatpush3.bf16.msra.mxu1 %v604_v6 }
  0x24   : > { %546 = vmatprep.subr.bf16.mxu0 %v605_v7  ;;  %565 = vmatprep.subr.bf16.mxu1 %v605_v7 }
  0x27   : > { %547 = vmatpush3.bf16.msra.mxu0 %v605_v7  ;;  %573 = vmatpush3.bf16.msra.mxu1 %v605_v7 }
  0x28   : > { %548 = vmatprep.subr.bf16.mxu0 %v606_v8  ;;  %566 = vmatprep.subr.bf16.mxu1 %v606_v8 }
  0x2b   : > { %549 = vmatpush3.bf16.msra.mxu0 %v606_v8  ;;  %574 = vmatpush3.bf16.msra.mxu1 %v606_v8 }
  0x2c   : > { %550 = vmatprep.subr.bf16.mxu0 %v607_v9  ;;  %567 = vmatprep.subr.bf16.mxu1 %v607_v9 }
  0x2f   : > { %551 = vmatpush3.bf16.msra.mxu0 %v607_v9  ;;  %575 = vmatpush3.bf16.msra.mxu1 %v607_v9 }
  0x32   : > { %553 = vmatmul.mubr.bf16.vlgmr.msra.gmra.mrb[0].mxu0 %v610_v10  ;;  %557 = vmatmul.mubr.bf16.vlgmr.msra.gmra.mrb[0].mxu1 %v611_v11 }
 0x105   : > { %v554_v12 = vpop.f32.mrb[0].mxu0  ;;  %v558_v13 = vpop.f32.mrb[0].mxu1 }
 0x106   : > { %v306_v14 = vpop.f32.mrb[1].mxu0  ;;  %v322_v15 = vpop.f32.mrb[1].mxu1 }
 0x107   : > { %v555_v16 = vpop.f32.mrb[2].mxu0  ;;  %v559_v17 = vpop.f32.mrb[2].mxu1 }
 0x108   : > { %v509_v18 = vpack.c.bf16 %v555_v16, %v554_v12  ;;  %v519_v19 = vpack.c.bf16 %v559_v17, %v558_v13  ;;  %v309_v20 = vpop.f32.mrb[3].mxu0  ;;  %v325_v21 = vpop.f32.mrb[3].mxu1 }
 0x109   : > { %v504_v22 = vpack.c.bf16 %v309_v20, %v306_v14  ;;  %v514_v23 = vpack.c.bf16 %v325_v21, %v322_v15 }
 0x10a   : > { %521 = vst [vmem:[%s174_s28 + $0x8] sm:$0xff] %v509_v18   ;;  %523 = vst [vmem:[%s174_s28 + $0x18] sm:$0xff] %v519_v19  }
 0x10b   : > { %505 = vst [vmem:[%s174_s28] sm:$0xff] %v504_v22   ;;  %522 = vst [vmem:[%s174_s28 + $0x10] sm:$0xff] %v514_v23  }
 0x10c PF: > { %s12_s11 = sadd.s32 1, %s634_s11   ;;  %s713_s9 = smov %s630_s10 }
 0x10d   : > { %p9_p5 = scmp.ge.s32.totalorder %s12_s11, 4   ;;  %s714_s10 = smov %s716_s12 }
 0x10f   :  { %11 = sbr.rel (!%p9_p5) target bundleno = 2 (0x2), region = 58 }

// kernel: psp_forward.8
= control target key start
LH: loop header
LB: loop body
LE: loop exit
PB: predicated region body
PF: predicated region fallthrough
CT: control target
= control target key end

     0   :  { %s661_s9 = smov 0   ;;  %s663_s10 = smov 0   ;;  %s718_s0 = inlined_call_operand.vmem [shape: bf16[80,64], index: 0, kind: input, shape index: {}]   ;;  %s719_s1 = inlined_call_operand.vmem [shape: bf16[2,64,128], index: 1, kind: input, shape index: {}]   ;;  %s720_s2 = inlined_call_operand.vmem [shape: bf16[2,80,128], index: 2, kind: output, shape index: {}]  }
   0x1   :  { %s665_s11 = smov 0  }
   0x2 LB: > { %s24_s12 = sadd.s32 1, %s638_s10  ;;  %p469_p0 = scmp.ge.s32.totalorder %s642_s11, 1  ;;  %s642_s11 = sphi %s665_s11, %s12_s11   ;;  %s638_s10 = sphi %s663_s10, %s722_s10   ;;  %s634_s9 = sphi %s661_s9, %s721_s9  }
   0x3   : > { %p26_p1 = scmp.ge.s32.totalorder %s24_s12, 2  ;;  %p131_p2 = scmp.lt.s32.totalorder %s642_s11, 3 }
   0x5   : > { %s724_s12 = smov (%p26_p1, %s24_s12), 0  ;;  %p132_p3 = pnand %p469_p0, %p131_p2 }
   0x6   : > { %p159_p4 = scmp.lt.s32.totalorder (!%p132_p3), %s634_s9, 1  ;;  %v644_v0 = vmov (!%p132_p3), 0.0   ;;  %vm645_vm0 = vmmov (!%p132_p3), 0   ;;  %v615_v5 = vld [vmem:[%s718_s0] sm:$0xff] (!%p132_p3)   ;;  %v616_v6 = vld [vmem:[%s718_s0 + $0x18] sm:$0xff] (!%p132_p3)   ;;  %vm243_vm1 = vcmask (!%p132_p3), 523264  }
   0x7   : > { %135 = sbr.rel (%p132_p3) target bundleno = 266 (0x10a), region = 28  ;;  %548 = vmatprep.subr.bf16.mxu0 (!%p132_p3), %v644_v0  ;;  %576 = vmatprep.subr.bf16.mxu1 (!%p132_p3), %v644_v0  ;;  %v617_v7 = vld [vmem:[%s718_s0 + $0x8] sm:$0xff] (!%p132_p3)   ;;  %v618_v8 = vld [vmem:[%s718_s0 + $0x20] sm:$0xff] (!%p132_p3)   ;;  %v619_v9 = vld [vmem:[%s718_s0 + $0x10] sm:$0xff] (!%p132_p3)  }
   0x8   : > { %556 = vmatprep.mubr.msk.bf16.mxu0 (!%p132_p3), %vm645_vm0, %v644_v0  ;;  %568 = vmatprep.mubr.msk.bf16.mxu1 (!%p132_p3), %vm645_vm0, %v644_v0 }
   0xe   : > { %s726_s9 = smov (!%p159_p4, %s634_s9), 1 }
   0xf   : > { %s499_s13 = sshll.u32 %s726_s9, 5  ;;  %s584_s27 = smul.u32 40, %s726_s9 }
  0x10   : > { %s166_s16 = scalar_lea.vmem %s719_s1, %s499_s13 }
  0x11   : > { %v611_v1 = vld [vmem:[%s166_s16] sm:$0xff]   ;;  %v612_v2 = vld [vmem:[%s166_s16 + $0x8] sm:$0xff]   ;;  %v613_v3 = vld [vmem:[%s166_s16 + $0x10] sm:$0xff]   ;;  %s174_s30 = scalar_lea.vmem %s720_s2, %s584_s27 }
  0x12   : > { %549 = vmatpush3.bf16.msra.mxu0 %v611_v1  ;;  %580 = vmatpush3.bf16.msra.mxu1 %v611_v1  ;;  %v614_v4 = vld [vmem:[%s166_s16 + $0x18] sm:$0xff]  }
  0x13   : > { %550 = vmatprep.subr.bf16.mxu0 %v644_v0  ;;  %577 = vmatprep.subr.bf16.mxu1 %v644_v0 }
  0x16   : > { %551 = vmatpush3.bf16.msra.mxu0 %v612_v2  ;;  %581 = vmatpush3.bf16.msra.mxu1 %v612_v2 }
  0x17   : > { %552 = vmatprep.subr.bf16.mxu0 %v644_v0  ;;  %578 = vmatprep.subr.bf16.mxu1 %v644_v0 }
  0x1a   : > { %553 = vmatpush3.bf16.msra.mxu0 %v613_v3  ;;  %582 = vmatpush3.bf16.msra.mxu1 %v613_v3 }
  0x1b   : > { %554 = vmatprep.subr.bf16.mxu0 %v644_v0  ;;  %579 = vmatprep.subr.bf16.mxu1 %v644_v0 }
  0x1e   : > { %555 = vmatpush3.bf16.msra.mxu0 %v614_v4  ;;  %583 = vmatpush3.bf16.msra.mxu1 %v614_v4 }
  0x21   : > { %557 = vmatmul.mubr.msk.bf16.vlgmr.msra.gmra.mrb[0].mxu0 %vm243_vm1, %v615_v5  ;;  %569 = vmatmul.mubr.msk.bf16.vlgmr.msra.gmra.mrb[0].mxu1 %vm243_vm1, %v616_v6 }
  0x22   : > { %560 = vmatprep.mubr.msk.bf16.mxu0 %vm645_vm0, %v644_v0  ;;  %572 = vmatprep.mubr.msk.bf16.mxu1 %vm645_vm0, %v644_v0 }
  0x29   : > { %561 = vmatmul.mubr.msk.bf16.gmra.mrb[4].mxu0 %vm243_vm1, %v617_v7  ;;  %573 = vmatmul.mubr.msk.bf16.gmra.mrb[4].mxu1 %vm243_vm1, %v618_v8 }
  0x2a   : > { %564 = vmatprep.mubr.msk.bf16.mxu0 %vm645_vm0, %v644_v0 }
  0x31   : > { %565 = vmatmul.mubr.msk.bf16.gmra.mrb[8].mxu0 %vm243_vm1, %v619_v9 }
  0xf4   : > { %v293_v10 = vpop.f32.mrb[0].mxu0  ;;  %v317_v11 = vpop.f32.mrb[0].mxu1 }
  0xf5   : > { %v558_v12 = vpop.f32.mrb[1].mxu0  ;;  %v570_v13 = vpop.f32.mrb[1].mxu1 }
  0xf6   : > { %v296_v14 = vpop.f32.mrb[2].mxu0  ;;  %v320_v15 = vpop.f32.mrb[2].mxu1 }
  0xf7   : > { %v513_v16 = vpack.c.bf16 %v296_v14, %v293_v10  ;;  %v559_v17 = vpop.f32.mrb[3].mxu0  ;;  %v528_v18 = vpack.c.bf16 %v320_v15, %v317_v11  ;;  %v571_v19 = vpop.f32.mrb[3].mxu1 }
  0xf9   : > { %514 = vst [vmem:[%s174_s30] sm:$0xff] %v513_v16   ;;  %537 = vst [vmem:[%s174_s30 + $0x18] sm:$0xff] %v528_v18  }
  0xfc   : > { %v301_v20 = vpop.f32.mrb[4].mxu0  ;;  %v325_v21 = vpop.f32.mrb[4].mxu1 }
  0xfd   : > { %v562_v22 = vpop.f32.mrb[5].mxu0  ;;  %v574_v23 = vpop.f32.mrb[5].mxu1 }
  0xfe   : > { %v304_v24 = vpop.f32.mrb[6].mxu0  ;;  %v328_v25 = vpop.f32.mrb[6].mxu1 }
  0xff   : > { %v518_v26 = vpack.c.bf16 %v304_v24, %v301_v20  ;;  %v563_v27 = vpop.f32.mrb[7].mxu0  ;;  %v533_v28 = vpack.c.bf16 %v328_v25, %v325_v21  ;;  %v575_v29 = vpop.f32.mrb[7].mxu1 }
 0x101   : > { %535 = vst [vmem:[%s174_s30 + $0x8] sm:$0xff] %v518_v26   ;;  %538 = vst [vmem:[%s174_s30 + $0x20] sm:$0xff] %v533_v28  }
 0x104   : > { %v309_v30 = vpop.f32.mrb[8].mxu0 }
 0x105   : > { %v566_v31 = vpop.f32.mrb[9].mxu0 }
 0x106   : > { %v312_v32 = vpop.f32.mrb[10].mxu0 }
 0x107   : > { %v523_v33 = vpack.c.bf16 %v312_v32, %v309_v30  ;;  %v567_v34 = vpop.f32.mrb[11].mxu0 }
 0x109   : > { %536 = vst [vmem:[%s174_s30 + $0x10] sm:$0xff] %v523_v33  }
 0x10a PF: > { %s12_s11 = sadd.s32 1, %s642_s11   ;;  %s721_s9 = smov %s638_s10 }
 0x10b   : > { %p9_p5 = scmp.ge.s32.totalorder %s12_s11, 4   ;;  %s722_s10 = smov %s724_s12 }
 0x10d   :  { %11 = sbr.rel (!%p9_p5) target bundleno = 2 (0x2), region = 58 }

// kernel: psp_forward.7
= control target key start
LH: loop header
LB: loop body
LE: loop exit
PB: predicated region body
PF: predicated region fallthrough
CT: control target
= control target key end

     0   :  { %s827_s1 = inlined_call_operand.vmem [shape: bf16[128,128], index: 1, kind: input, shape index: {}]   ;;  %s828_s0 = inlined_call_operand.vmem [shape: bf16[128,128], index: 0, kind: input, shape index: {}]   ;;  %s829_s2 = inlined_call_operand.vmem [shape: f32[1,128], index: 2, kind: input, shape index: {}]   ;;  %s830_s3 = inlined_call_operand.vmem [shape: f32[128,128], index: 3, kind: input, shape index: {}]   ;;  %s831_s4 = inlined_call_operand.vmem [shape: bf16[128,128], index: 4, kind: output, shape index: {}]  }
   0x1   :  { %v645_v0 = vld [vmem:[%s827_s1] sm:$0xff]   ;;  %v646_v1 = vld [vmem:[%s827_s1 + $0x8] sm:$0xff]   ;;  %v647_v2 = vld [vmem:[%s827_s1 + $0x10] sm:$0xff]  }
   0x2   :  { %597 = vmatprep.subr.bf16.mxu0 %v645_v0  ;;  %629 = vmatprep.subr.bf16.mxu1 %v645_v0  ;;  %v648_v3 = vld [vmem:[%s827_s1 + $0x18] sm:$0xff]   ;;  %v653_v4 = vld [vmem:[%s828_s0] sm:$0xff]   ;;  %v650_v7 = vld [vmem:[%s827_s1 + $0x28] sm:$0xff]  }
   0x3   :  { %598 = vmatpush3.bf16.msra.mxu0 %v645_v0  ;;  %637 = vmatpush3.bf16.msra.mxu1 %v645_v0  ;;  %v654_v5 = vld [vmem:[%s828_s0 + $0x20] sm:$0xff]   ;;  %v651_v8 = vld [vmem:[%s827_s1 + $0x30] sm:$0xff]   ;;  %v652_v9 = vld [vmem:[%s827_s1 + $0x38] sm:$0xff]  }
   0x4   :  { %599 = vmatprep.subr.bf16.mxu0 %v646_v1  ;;  %630 = vmatprep.subr.bf16.mxu1 %v646_v1  ;;  %v649_v6 = vld [vmem:[%s827_s1 + $0x20] sm:$0xff]   ;;  %v655_v10 = vld [vmem:[%s828_s0 + $0x8] sm:$0xff]   ;;  %v657_v12 = vld [vmem:[%s828_s0 + $0x10] sm:$0xff]  }
   0x5   :  { %613 = vmatprep.mubr.bf16.mxu0 %v653_v4  ;;  %621 = vmatprep.mubr.bf16.mxu1 %v654_v5  ;;  %v656_v11 = vld [vmem:[%s828_s0 + $0x28] sm:$0xff]   ;;  %v658_v13 = vld [vmem:[%s828_s0 + $0x30] sm:$0xff]   ;;  %v659_v14 = vld [vmem:[%s828_s0 + $0x18] sm:$0xff]  }
   0x6   :  { %v660_v15 = vld [vmem:[%s828_s0 + $0x38] sm:$0xff]   ;;  %v737_v16 = vld [vmem:[%s829_s2] ss:$0 sm:$0xff]  ;;  %v371_v28 = vld [vmem:[%s830_s3 + $0x10] sm:$0xff] }
   0x7   :  { %600 = vmatpush3.bf16.msra.mxu0 %v646_v1  ;;  %638 = vmatpush3.bf16.msra.mxu1 %v646_v1  ;;  %v379_v30 = vld [vmem:[%s830_s3 + $0x50] sm:$0xff]  ;;  %v369_v36 = vld [vmem:[%s830_s3] sm:$0xff]  ;;  %v372_v38 = vld [vmem:[%s830_s3 + $0x18] sm:$0xff] }
   0x8   :  { %601 = vmatprep.subr.bf16.mxu0 %v647_v2  ;;  %631 = vmatprep.subr.bf16.mxu1 %v647_v2  ;;  %v380_v39 = vld [vmem:[%s830_s3 + $0x58] sm:$0xff]  ;;  %v377_v42 = vld [vmem:[%s830_s3 + $0x40] sm:$0xff]  ;;  %v370_v45 = vld [vmem:[%s830_s3 + $0x8] sm:$0xff] }
   0x9   :  { %v378_v46 = vld [vmem:[%s830_s3 + $0x48] sm:$0xff] }
   0xb   :  { %602 = vmatpush3.bf16.msra.mxu0 %v647_v2  ;;  %639 = vmatpush3.bf16.msra.mxu1 %v647_v2 }
   0xc   :  { %603 = vmatprep.subr.bf16.mxu0 %v648_v3  ;;  %632 = vmatprep.subr.bf16.mxu1 %v648_v3 }
   0xf   :  { %604 = vmatpush3.bf16.msra.mxu0 %v648_v3  ;;  %640 = vmatpush3.bf16.msra.mxu1 %v648_v3 }
  0x10   :  { %605 = vmatprep.subr.bf16.mxu0 %v649_v6  ;;  %633 = vmatprep.subr.bf16.mxu1 %v649_v6 }
  0x13   :  { %606 = vmatpush3.bf16.msra.mxu0 %v649_v6  ;;  %641 = vmatpush3.bf16.msra.mxu1 %v649_v6 }
  0x14   :  { %607 = vmatprep.subr.bf16.mxu0 %v650_v7  ;;  %634 = vmatprep.subr.bf16.mxu1 %v650_v7 }
  0x17   :  { %608 = vmatpush3.bf16.msra.mxu0 %v650_v7  ;;  %642 = vmatpush3.bf16.msra.mxu1 %v650_v7 }
  0x18   :  { %609 = vmatprep.subr.bf16.mxu0 %v651_v8  ;;  %635 = vmatprep.subr.bf16.mxu1 %v651_v8 }
  0x1b   :  { %610 = vmatpush3.bf16.msra.mxu0 %v651_v8  ;;  %643 = vmatpush3.bf16.msra.mxu1 %v651_v8  ;;  %v375_v8 = vld [vmem:[%s830_s3 + $0x30] sm:$0xff] }
  0x1c   :  { %611 = vmatprep.subr.bf16.mxu0 %v652_v9  ;;  %636 = vmatprep.subr.bf16.mxu1 %v652_v9 }
  0x1f   :  { %612 = vmatpush3.bf16.msra.mxu0 %v652_v9  ;;  %644 = vmatpush3.bf16.msra.mxu1 %v652_v9 }
  0x22   :  { %614 = vmatmul.mubr.bf16.vlgmr.msra.gmra.mrb[0].mxu0 %v655_v10  ;;  %622 = vmatmul.mubr.bf16.vlgmr.msra.gmra.mrb[0].mxu1 %v656_v11  ;;  %v383_v10 = vld [vmem:[%s830_s3 + $0x70] sm:$0xff] }
  0x23   :  { %617 = vmatprep.mubr.bf16.mxu0 %v657_v12  ;;  %625 = vmatprep.mubr.bf16.mxu1 %v658_v13 }
  0x2a   :  { %618 = vmatmul.mubr.bf16.gmra.mrb[4].mxu0 %v659_v14  ;;  %626 = vmatmul.mubr.bf16.gmra.mrb[4].mxu1 %v660_v15 }
  0xf5   :  { %v615_v17 = vpop.f32.mrb[0].mxu0  ;;  %v623_v18 = vpop.f32.mrb[0].mxu1 }
  0xf6   :  { %v339_v19 = vadd.f32 %v615_v17, %v737_v16  ;;  %v347_v20 = vadd.f32 %v623_v18, %v737_v16  ;;  %v216_v21 = vpop.f32.mrb[1].mxu0  ;;  %v248_v22 = vpop.f32.mrb[1].mxu1  ;;  %v373_v17 = vld [vmem:[%s830_s3 + $0x20] sm:$0xff] }
  0xf7   :  { %v337_v23 = vadd.f32 %v737_v16, %v216_v21  ;;  %v345_v24 = vadd.f32 %v737_v16, %v248_v22  ;;  %v616_v25 = vpop.f32.mrb[2].mxu0  ;;  %v624_v26 = vpop.f32.mrb[2].mxu1 }
  0xf8   :  { %v355_v27 = vmax.f32 %v339_v19, 0.0  ;;  %v363_v29 = vmax.f32 %v347_v20, 0.0  ;;  %v340_v31 = vadd.f32 %v616_v25, %v737_v16  ;;  %v348_v32 = vadd.f32 %v624_v26, %v737_v16  ;;  %v219_v33 = vpop.f32.mrb[3].mxu0  ;;  %v251_v34 = vpop.f32.mrb[3].mxu1  ;;  %v376_v19 = vld [vmem:[%s830_s3 + $0x38] sm:$0xff]  ;;  %v374_v26 = vld [vmem:[%s830_s3 + $0x28] sm:$0xff] }
  0xf9   :  { %v353_v35 = vmax.f32 %v337_v23, 0.0  ;;  %v361_v37 = vmax.f32 %v345_v24, 0.0  ;;  %v338_v40 = vadd.f32 %v737_v16, %v219_v33  ;;  %v346_v41 = vadd.f32 %v737_v16, %v251_v34  ;;  %v384_v20 = vld [vmem:[%s830_s3 + $0x78] sm:$0xff]  ;;  %v381_v23 = vld [vmem:[%s830_s3 + $0x60] sm:$0xff] }
  0xfa   :  { %v356_v43 = vmax.f32 %v340_v31, 0.0  ;;  %v364_v44 = vmax.f32 %v348_v32, 0.0  ;;  %v387_v49 = vmul.f32 %v371_v28, %v355_v27  ;;  %v395_v50 = vmul.f32 %v379_v30, %v363_v29  ;;  %v382_v27 = vld [vmem:[%s830_s3 + $0x68] sm:$0xff] }
  0xfb   :  { %v354_v47 = vmax.f32 %v338_v40, 0.0  ;;  %v362_v48 = vmax.f32 %v346_v41, 0.0  ;;  %v385_v53 = vmul.f32 %v369_v36, %v353_v35  ;;  %v393_v54 = vmul.f32 %v377_v42, %v361_v37 }
  0xfc   :  { %v388_v51 = vmul.f32 %v372_v38, %v356_v43  ;;  %v396_v52 = vmul.f32 %v380_v39, %v364_v44 }
  0xfd   :  { %v386_v55 = vmul.f32 %v370_v45, %v354_v47  ;;  %v394_v56 = vmul.f32 %v378_v46, %v362_v48  ;;  %v619_v57 = vpop.f32.mrb[4].mxu0  ;;  %v627_v58 = vpop.f32.mrb[4].mxu1 }
  0xfe   :  { %v542_v59 = vpack.c.bf16 %v388_v51, %v387_v49  ;;  %v562_v60 = vpack.c.bf16 %v396_v52, %v395_v50  ;;  %v343_v61 = vadd.f32 %v619_v57, %v737_v16  ;;  %v351_v62 = vadd.f32 %v627_v58, %v737_v16  ;;  %v232_v63 = vpop.f32.mrb[5].mxu0  ;;  %v264_v0 = vpop.f32.mrb[5].mxu1 }
  0xff   :  { %v537_v1 = vpack.c.bf16 %v386_v55, %v385_v53  ;;  %v557_v2 = vpack.c.bf16 %v394_v56, %v393_v54  ;;  %v341_v3 = vadd.f32 %v737_v16, %v232_v63  ;;  %v349_v4 = vadd.f32 %v737_v16, %v264_v0  ;;  %v620_v5 = vpop.f32.mrb[6].mxu0  ;;  %v628_v6 = vpop.f32.mrb[6].mxu1 }
 0x100   :  { %574 = vst [vmem:[%s831_s4 + $0x8] sm:$0xff] %v542_v59   ;;  %578 = vst [vmem:[%s831_s4 + $0x28] sm:$0xff] %v562_v60   ;;  %v359_v7 = vmax.f32 %v343_v61, 0.0  ;;  %v367_v9 = vmax.f32 %v351_v62, 0.0  ;;  %v344_v11 = vadd.f32 %v620_v5, %v737_v16  ;;  %v352_v12 = vadd.f32 %v628_v6, %v737_v16  ;;  %v235_v13 = vpop.f32.mrb[7].mxu0  ;;  %v267_v14 = vpop.f32.mrb[7].mxu1 }
 0x101   :  { %538 = vst [vmem:[%s831_s4] sm:$0xff] %v537_v1   ;;  %577 = vst [vmem:[%s831_s4 + $0x20] sm:$0xff] %v557_v2   ;;  %v357_v15 = vmax.f32 %v341_v3, 0.0  ;;  %v365_v18 = vmax.f32 %v349_v4, 0.0  ;;  %v342_v21 = vadd.f32 %v737_v16, %v235_v13  ;;  %v350_v22 = vadd.f32 %v737_v16, %v267_v14 }
 0x102   :  { %v360_v24 = vmax.f32 %v344_v11, 0.0  ;;  %v368_v25 = vmax.f32 %v352_v12, 0.0  ;;  %v391_v30 = vmul.f32 %v375_v8, %v359_v7  ;;  %v399_v31 = vmul.f32 %v383_v10, %v367_v9 }
 0x103   :  { %v358_v28 = vmax.f32 %v342_v21, 0.0  ;;  %v366_v29 = vmax.f32 %v350_v22, 0.0  ;;  %v389_v33 = vmul.f32 %v373_v17, %v357_v15  ;;  %v397_v34 = vmul.f32 %v381_v23, %v365_v18 }
 0x104   :  { %v392_v32 = vmul.f32 %v376_v19, %v360_v24  ;;  %v400_v16 = vmul.f32 %v384_v20, %v368_v25 }
 0x105   :  { %v390_v35 = vmul.f32 %v374_v26, %v358_v28  ;;  %v398_v36 = vmul.f32 %v382_v27, %v366_v29 }
 0x106   :  { %v552_v37 = vpack.c.bf16 %v392_v32, %v391_v30  ;;  %v572_v38 = vpack.c.bf16 %v400_v16, %v399_v31 }
 0x107   :  { %v547_v39 = vpack.c.bf16 %v390_v35, %v389_v33  ;;  %v567_v40 = vpack.c.bf16 %v398_v36, %v397_v34 }
 0x108   :  { %576 = vst [vmem:[%s831_s4 + $0x18] sm:$0xff] %v552_v37   ;;  %580 = vst [vmem:[%s831_s4 + $0x38] sm:$0xff] %v572_v38  }
 0x109   :  { %575 = vst [vmem:[%s831_s4 + $0x10] sm:$0xff] %v547_v39   ;;  %579 = vst [vmem:[%s831_s4 + $0x30] sm:$0xff] %v567_v40  }

// kernel: psp_forward.10
= control target key start
LH: loop header
LB: loop body
LE: loop exit
PB: predicated region body
PF: predicated region fallthrough
CT: control target
= control target key end

     0   :  { %s619_s9 = smov 0   ;;  %s621_s10 = smov 0   ;;  %s678_s0 = inlined_call_operand.vmem [shape: bf16[48,128], index: 0, kind: input, shape index: {}]   ;;  %s679_s1 = inlined_call_operand.vmem [shape: bf16[2,128,128], index: 1, kind: input, shape index: {}]   ;;  %s680_s2 = inlined_call_operand.vmem [shape: bf16[2,48,128], index: 2, kind: output, shape index: {}]  }
   0x1   :  { %s623_s11 = smov 0  }
   0x2 LB: > { %s24_s12 = sadd.s32 1, %s596_s10  ;;  %p438_p0 = scmp.ge.s32.totalorder %s600_s11, 1  ;;  %s600_s11 = sphi %s623_s11, %s12_s11   ;;  %s596_s10 = sphi %s621_s10, %s682_s10   ;;  %s592_s9 = sphi %s619_s9, %s681_s9  }
   0x3   : > { %p26_p1 = scmp.ge.s32.totalorder %s24_s12, 2  ;;  %p131_p2 = scmp.lt.s32.totalorder %s600_s11, 3 }
   0x5   : > { %s684_s12 = smov (%p26_p1, %s24_s12), 0  ;;  %p132_p3 = pnand %p438_p0, %p131_p2 }
   0x6   : > { %p159_p4 = scmp.lt.s32.totalorder (!%p132_p3), %s592_s9, 1  ;;  %v602_v0 = vmov (!%p132_p3), 0.0   ;;  %vm603_vm0 = vmmov (!%p132_p3), 0   ;;  %v575_v9 = vld [vmem:[%s678_s0 + $0x8] sm:$0xff] (!%p132_p3)   ;;  %v576_v10 = vld [vmem:[%s678_s0] sm:$0xff] (!%p132_p3)   ;;  %v577_v11 = vld [vmem:[%s678_s0 + $0x10] sm:$0xff] (!%p132_p3)  }
   0x7   : > { %135 = sbr.rel (%p132_p3) target bundleno = 274 (0x112), region = 28  ;;  %524 = vmatprep.subr.bf16.mxu1 (!%p132_p3), %v602_v0  ;;  %496 = vmatprep.subr.bf16.mxu0 (!%p132_p3), %v602_v0 }
   0x8   : > { %516 = vmatprep.mubr.msk.bf16.mxu1 (!%p132_p3), %vm603_vm0, %v602_v0  ;;  %512 = vmatprep.mubr.msk.bf16.mxu0 (!%p132_p3), %vm603_vm0, %v602_v0 }
   0xe   : > { %s686_s9 = smov (!%p159_p4, %s592_s9), 1 }
   0xf   : > { %s461_s13 = sshll.u32 %s686_s9, 6  ;;  %s540_s23 = smul.u32 24, %s686_s9 }
  0x10   : > { %s645_s16 = scalar_lea.vmem %s679_s1, %s461_s13 }
  0x11   : > { %v567_v1 = vld [vmem:[%s645_s16] sm:$0xff]   ;;  %v568_v2 = vld [vmem:[%s645_s16 + $0x8] sm:$0xff]   ;;  %v569_v3 = vld [vmem:[%s645_s16 + $0x10] sm:$0xff]   ;;  %s174_s26 = scalar_lea.vmem %s680_s2, %s540_s23 }
  0x12   : > { %532 = vmatpush3.bf16.msra.mxu1 %v567_v1  ;;  %497 = vmatpush3.bf16.msra.mxu0 %v567_v1  ;;  %v570_v4 = vld [vmem:[%s645_s16 + $0x18] sm:$0xff]   ;;  %v571_v5 = vld [vmem:[%s645_s16 + $0x20] sm:$0xff]   ;;  %v572_v6 = vld [vmem:[%s645_s16 + $0x28] sm:$0xff]  }
  0x13   : > { %525 = vmatprep.subr.bf16.mxu1 %v602_v0  ;;  %498 = vmatprep.subr.bf16.mxu0 %v602_v0  ;;  %v573_v7 = vld [vmem:[%s645_s16 + $0x30] sm:$0xff]   ;;  %v574_v8 = vld [vmem:[%s645_s16 + $0x38] sm:$0xff]  }
  0x16   : > { %533 = vmatpush3.bf16.msra.mxu1 %v568_v2  ;;  %499 = vmatpush3.bf16.msra.mxu0 %v568_v2 }
  0x17   : > { %526 = vmatprep.subr.bf16.mxu1 %v602_v0  ;;  %500 = vmatprep.subr.bf16.mxu0 %v602_v0 }
  0x1a   : > { %534 = vmatpush3.bf16.msra.mxu1 %v569_v3  ;;  %501 = vmatpush3.bf16.msra.mxu0 %v569_v3 }
  0x1b   : > { %527 = vmatprep.subr.bf16.mxu1 %v602_v0  ;;  %502 = vmatprep.subr.bf16.mxu0 %v602_v0 }
  0x1e   : > { %535 = vmatpush3.bf16.msra.mxu1 %v570_v4  ;;  %503 = vmatpush3.bf16.msra.mxu0 %v570_v4 }
  0x1f   : > { %528 = vmatprep.subr.bf16.mxu1 %v602_v0  ;;  %504 = vmatprep.subr.bf16.mxu0 %v602_v0 }
  0x22   : > { %536 = vmatpush3.bf16.msra.mxu1 %v571_v5  ;;  %505 = vmatpush3.bf16.msra.mxu0 %v571_v5 }
  0x23   : > { %529 = vmatprep.subr.bf16.mxu1 %v602_v0  ;;  %506 = vmatprep.subr.bf16.mxu0 %v602_v0 }
  0x26   : > { %537 = vmatpush3.bf16.msra.mxu1 %v572_v6  ;;  %507 = vmatpush3.bf16.msra.mxu0 %v572_v6 }
  0x27   : > { %530 = vmatprep.subr.bf16.mxu1 %v602_v0  ;;  %508 = vmatprep.subr.bf16.mxu0 %v602_v0 }
  0x2a   : > { %538 = vmatpush3.bf16.msra.mxu1 %v573_v7  ;;  %509 = vmatpush3.bf16.msra.mxu0 %v573_v7 }
  0x2b   : > { %531 = vmatprep.subr.bf16.mxu1 %v602_v0  ;;  %510 = vmatprep.subr.bf16.mxu0 %v602_v0 }
  0x2e   : > { %539 = vmatpush3.bf16.msra.mxu1 %v574_v8  ;;  %511 = vmatpush3.bf16.msra.mxu0 %v574_v8 }
  0x31   : > { %517 = vmatmul.mubr.bf16.vlgmr.msra.gmra.mrb[0].mxu1 %v575_v9  ;;  %513 = vmatmul.mubr.bf16.vlgmr.msra.gmra.mrb[0].mxu0 %v576_v10 }
  0x32   : > { %520 = vmatprep.mubr.msk.bf16.mxu1 %vm603_vm0, %v602_v0 }
  0x39   : > { %521 = vmatmul.mubr.bf16.gmra.mrb[4].mxu1 %v577_v11 }
 0x104   : > { %v306_v12 = vpop.f32.mrb[0].mxu1  ;;  %v298_v13 = vpop.f32.mrb[0].mxu0 }
 0x105   : > { %v518_v14 = vpop.f32.mrb[1].mxu1  ;;  %v514_v15 = vpop.f32.mrb[1].mxu0 }
 0x106   : > { %v309_v16 = vpop.f32.mrb[2].mxu1  ;;  %v301_v17 = vpop.f32.mrb[2].mxu0 }
 0x107   : > { %v476_v18 = vpack.c.bf16 %v309_v16, %v306_v12  ;;  %v519_v19 = vpop.f32.mrb[3].mxu1  ;;  %v471_v20 = vpack.c.bf16 %v301_v17, %v298_v13  ;;  %v515_v21 = vpop.f32.mrb[3].mxu0 }
 0x109   : > { %483 = vst [vmem:[%s174_s26 + $0x8] sm:$0xff] %v476_v18   ;;  %472 = vst [vmem:[%s174_s26] sm:$0xff] %v471_v20  }
 0x10c   : > { %v314_v22 = vpop.f32.mrb[4].mxu1 }
 0x10d   : > { %v522_v23 = vpop.f32.mrb[5].mxu1 }
 0x10e   : > { %v317_v24 = vpop.f32.mrb[6].mxu1 }
 0x10f   : > { %v481_v25 = vpack.c.bf16 %v317_v24, %v314_v22  ;;  %v523_v26 = vpop.f32.mrb[7].mxu1 }
 0x111   : > { %484 = vst [vmem:[%s174_s26 + $0x10] sm:$0xff] %v481_v25  }
 0x112 PF: > { %s12_s11 = sadd.s32 1, %s600_s11   ;;  %s681_s9 = smov %s596_s10 }
 0x113   : > { %p9_p5 = scmp.ge.s32.totalorder %s12_s11, 4   ;;  %s682_s10 = smov %s684_s12 }
 0x115   :  { %11 = sbr.rel (!%p9_p5) target bundleno = 2 (0x2), region = 58 }

// kernel: psp_forward.11
= control target key start
LH: loop header
LB: loop body
LE: loop exit
PB: predicated region body
PF: predicated region fallthrough
CT: control target
= control target key end

     0   :  { %s605_s9 = smov 0   ;;  %s607_s10 = smov 0   ;;  %s669_s0 = inlined_call_operand.vmem [shape: bf16[48,128], index: 0, kind: input, shape index: {}]   ;;  %s670_s1 = inlined_call_operand.vmem [shape: bf16[2,128,256], index: 1, kind: input, shape index: {}]   ;;  %s671_s2 = inlined_call_operand.vmem [shape: f32[2,48,256], index: 2, kind: output, shape index: {}]  }
   0x1   :  { %s609_s11 = smov 0  }
   0x2 LB: > { %s24_s12 = sadd.s32 1, %s583_s10  ;;  %p470_p0 = scmp.ge.s32.totalorder %s587_s11, 1  ;;  %s587_s11 = sphi %s609_s11, %s12_s11   ;;  %s583_s10 = sphi %s607_s10, %s673_s10   ;;  %s579_s9 = sphi %s605_s9, %s672_s9  }
   0x3   : > { %p26_p1 = scmp.ge.s32.totalorder %s24_s12, 2  ;;  %p133_p2 = scmp.lt.s32.totalorder %s587_s11, 3 }
   0x5   : > { %s675_s12 = smov (%p26_p1, %s24_s12), 0  ;;  %p134_p3 = pnand %p470_p0, %p133_p2 }
   0x6   : > { %p164_p4 = scmp.lt.s32.totalorder (!%p134_p3), %s579_s9, 1  ;;  %v589_v0 = vmov (!%p134_p3), 0   ;;  %v562_v17 = vld [vmem:[%s669_s0 + $0x8] sm:$0xff] (!%p134_p3)   ;;  %v563_v18 = vld [vmem:[%s669_s0] sm:$0xff] (!%p134_p3)   ;;  %v564_v19 = vld [vmem:[%s669_s0 + $0x10] sm:$0xff] (!%p134_p3)  }
   0x7   : > { %137 = sbr.rel (%p134_p3) target bundleno = 274 (0x112), region = 28  ;;  %346 = vmatprep.mubr.bf16.mxu1 (!%p134_p3), %v589_v0  ;;  %336 = vmatprep.mubr.bf16.mxu0 (!%p134_p3), %v589_v0 }
   0xe   : > { %s677_s9 = smov (!%p164_p4, %s579_s9), 1 }
   0xf   : > { %s495_s13 = sshll.u32 %s677_s9, 7  ;;  %s512_s23 = smul.u32 96, %s677_s9 }
  0x10   : > { %s629_s16 = scalar_lea.vmem %s670_s1, %s495_s13 }
  0x11   : > { %v538_v1 = vld [vmem:[%s629_s16 + $0x4] ss:$8 sps:$4 sm:$0xff]   ;;  %v540_v2 = vld [vmem:[%s629_s16] ss:$8 sps:$4 sm:$0xff]   ;;  %v541_v3 = vld [vmem:[%s629_s16 + $0x14] ss:$8 sps:$4 sm:$0xff]   ;;  %s181_s26 = scalar_lea.vmem %s671_s2, %s512_s23 }
  0x12   : > { %496 = vmatprep.subr.bf16.mxu1 %v538_v1  ;;  %304 = vmatprep.subr.bf16.mxu0 %v538_v1  ;;  %v543_v4 = vld [vmem:[%s629_s16 + $0x10] ss:$8 sps:$4 sm:$0xff]   ;;  %v544_v5 = vld [vmem:[%s629_s16 + $0x24] ss:$8 sps:$4 sm:$0xff]   ;;  %v546_v6 = vld [vmem:[%s629_s16 + $0x20] ss:$8 sps:$4 sm:$0xff]  }
  0x13   : > { %504 = vmatpush1.bf16.msra.mxu1 %v540_v2  ;;  %305 = vmatpush1.bf16.msra.mxu0 %v540_v2  ;;  %v547_v7 = vld [vmem:[%s629_s16 + $0x34] ss:$8 sps:$4 sm:$0xff]   ;;  %v549_v8 = vld [vmem:[%s629_s16 + $0x30] ss:$8 sps:$4 sm:$0xff]   ;;  %v550_v9 = vld [vmem:[%s629_s16 + $0x44] ss:$8 sps:$4 sm:$0xff]  }
  0x14   : > { %497 = vmatprep.subr.bf16.mxu1 %v541_v3  ;;  %306 = vmatprep.subr.bf16.mxu0 %v541_v3  ;;  %v552_v10 = vld [vmem:[%s629_s16 + $0x40] ss:$8 sps:$4 sm:$0xff]   ;;  %v553_v11 = vld [vmem:[%s629_s16 + $0x54] ss:$8 sps:$4 sm:$0xff]   ;;  %v555_v12 = vld [vmem:[%s629_s16 + $0x50] ss:$8 sps:$4 sm:$0xff]  }
  0x15   : > { %v556_v13 = vld [vmem:[%s629_s16 + $0x64] ss:$8 sps:$4 sm:$0xff]   ;;  %v558_v14 = vld [vmem:[%s629_s16 + $0x60] ss:$8 sps:$4 sm:$0xff]   ;;  %v559_v15 = vld [vmem:[%s629_s16 + $0x74] ss:$8 sps:$4 sm:$0xff]  }
  0x16   : > { %v561_v16 = vld [vmem:[%s629_s16 + $0x70] ss:$8 sps:$4 sm:$0xff]  }
  0x17   : > { %505 = vmatpush1.bf16.msra.mxu1 %v543_v4  ;;  %307 = vmatpush1.bf16.msra.mxu0 %v543_v4 }
  0x18   : > { %498 = vmatprep.subr.bf16.mxu1 %v544_v5  ;;  %308 = vmatprep.subr.bf16.mxu0 %v544_v5 }
  0x1b   : > { %506 = vmatpush1.bf16.msra.mxu1 %v546_v6  ;;  %309 = vmatpush1.bf16.msra.mxu0 %v546_v6 }
  0x1c   : > { %499 = vmatprep.subr.bf16.mxu1 %v547_v7  ;;  %310 = vmatprep.subr.bf16.mxu0 %v547_v7 }
  0x1f   : > { %507 = vmatpush1.bf16.msra.mxu1 %v549_v8  ;;  %311 = vmatpush1.bf16.msra.mxu0 %v549_v8 }
  0x20   : > { %500 = vmatprep.subr.bf16.mxu1 %v550_v9  ;;  %312 = vmatprep.subr.bf16.mxu0 %v550_v9 }
  0x23   : > { %508 = vmatpush1.bf16.msra.mxu1 %v552_v10  ;;  %313 = vmatpush1.bf16.msra.mxu0 %v552_v10 }
  0x24   : > { %501 = vmatprep.subr.bf16.mxu1 %v553_v11  ;;  %314 = vmatprep.subr.bf16.mxu0 %v553_v11 }
  0x27   : > { %509 = vmatpush1.bf16.msra.mxu1 %v555_v12  ;;  %315 = vmatpush1.bf16.msra.mxu0 %v555_v12 }
  0x28   : > { %502 = vmatprep.subr.bf16.mxu1 %v556_v13  ;;  %316 = vmatprep.subr.bf16.mxu0 %v556_v13 }
  0x2b   : > { %510 = vmatpush1.bf16.msra.mxu1 %v558_v14  ;;  %317 = vmatpush1.bf16.msra.mxu0 %v558_v14 }
  0x2c   : > { %503 = vmatprep.subr.bf16.mxu1 %v559_v15  ;;  %318 = vmatprep.subr.bf16.mxu0 %v559_v15 }
  0x2f   : > { %511 = vmatpush1.bf16.msra.mxu1 %v561_v16  ;;  %319 = vmatpush1.bf16.msra.mxu0 %v561_v16 }
  0x32   : > { %347 = vmatmul.mubr.bf16.vlgmr.msra.gmra.mrb[0].mxu1 %v562_v17  ;;  %337 = vmatmul.mubr.bf16.vlgmr.msra.gmra.mrb[0].mxu0 %v563_v18 }
  0x33   : > { %356 = vmatprep.mubr.bf16.mxu1 %v589_v0 }
  0x3a   : > { %357 = vmatmul.mubr.bf16.gmra.mrb[4].mxu1 %v564_v19 }
 0x105   : > { %v348_v20 = vpop.f32.mrb[0].mxu1  ;;  %v338_v21 = vpop.f32.mrb[0].mxu0 }
 0x106   : > { %371 = vst [vmem:[%s181_s26 + $0x20] sm:$0xff] %v348_v20  ;;  %v350_v22 = vpop.f32.mrb[1].mxu1  ;;  %367 = vst [vmem:[%s181_s26] sm:$0xff] %v338_v21  ;;  %v340_v23 = vpop.f32.mrb[1].mxu0 }
 0x107   : > { %372 = vst [vmem:[%s181_s26 + $0x28] sm:$0xff] %v350_v22  ;;  %v352_v24 = vpop.f32.mrb[2].mxu1  ;;  %368 = vst [vmem:[%s181_s26 + $0x8] sm:$0xff] %v340_v23  ;;  %v342_v25 = vpop.f32.mrb[2].mxu0 }
 0x108   : > { %373 = vst [vmem:[%s181_s26 + $0x30] sm:$0xff] %v352_v24  ;;  %v354_v26 = vpop.f32.mrb[3].mxu1  ;;  %369 = vst [vmem:[%s181_s26 + $0x10] sm:$0xff] %v342_v25  ;;  %v344_v27 = vpop.f32.mrb[3].mxu0 }
 0x109   : > { %374 = vst [vmem:[%s181_s26 + $0x38] sm:$0xff] %v354_v26  ;;  %370 = vst [vmem:[%s181_s26 + $0x18] sm:$0xff] %v344_v27 }
 0x10d   : > { %v358_v28 = vpop.f32.mrb[4].mxu1 }
 0x10e   : > { %375 = vst [vmem:[%s181_s26 + $0x40] sm:$0xff] %v358_v28  ;;  %v360_v29 = vpop.f32.mrb[5].mxu1 }
 0x10f   : > { %376 = vst [vmem:[%s181_s26 + $0x48] sm:$0xff] %v360_v29  ;;  %v362_v30 = vpop.f32.mrb[6].mxu1 }
 0x110   : > { %377 = vst [vmem:[%s181_s26 + $0x50] sm:$0xff] %v362_v30  ;;  %v364_v31 = vpop.f32.mrb[7].mxu1 }
 0x111   : > { %378 = vst [vmem:[%s181_s26 + $0x58] sm:$0xff] %v364_v31 }
 0x112 PF: > { %s12_s11 = sadd.s32 1, %s587_s11   ;;  %s672_s9 = smov %s583_s10 }
 0x113   : > { %p9_p5 = scmp.ge.s32.totalorder %s12_s11, 4   ;;  %s673_s10 = smov %s675_s12 }
 0x115   :  { %11 = sbr.rel (!%p9_p5) target bundleno = 2 (0x2), region = 58 }

// kernel: psp_forward.9
= control target key start
LH: loop header
LB: loop body
LE: loop exit
PB: predicated region body
PF: predicated region fallthrough
CT: control target
= control target key end

     0   :  { %s3438_s18 = smov 0   ;;  %s4160_s0 = inlined_call_operand.vmem [shape: bf16[2,80,256], index: 0, kind: input, shape index: {}]   ;;  %s4161_s1 = inlined_call_operand.vmem [shape: bf16[9,256,128], index: 1, kind: input, shape index: {}]   ;;  %s4162_s2 = inlined_call_operand.vmem [shape: f32[1,128], index: 2, kind: input, shape index: {}]   ;;  %s4163_s3 = inlined_call_operand.vmem [shape: bf16[128,128], index: 3, kind: input, shape index: {}]   ;;  %s4164_s4 = inlined_call_operand.vmem [shape: f32[1,128], index: 4, kind: input, shape index: {}]   ;;  %s4165_s5 = inlined_call_operand.vmem [shape: f32[2,48,128], index: 5, kind: output, shape index: {}]  }
   0x1 LB: > { %s2430_s19 = sadd.s32 4294967295, %s3404_s18   ;;  %p2434_p0 = scmp.ge.s32.totalorder %s3404_s18, 1  ;;  %s3404_s18 = sphi %s3438_s18, %s15_s18  }
   0x2   : > { %p187_p1 = scmp.lt.s32.totalorder %s3404_s18, 3 }
   0x4   : > { %p188_p2 = pnand %p2434_p0, %p187_p1 }
   0x5   : > { %v3226_v0 = vld [vmem:[%s4161_s1 + $0xc0] sm:$0xff] (!%p188_p2)   ;;  %v3230_v4 = vld [vmem:[%s4161_s1 + $0xc8] sm:$0xff] (!%p188_p2)   ;;  %v3234_v8 = vld [vmem:[%s4161_s1 + $0xd0] sm:$0xff] (!%p188_p2)   ;;  %p215_p3 = scmp.lt.s32.totalorder (!%p188_p2), %s2430_s19, 1  ;;  %vm329_vm0 = vsmask.f32 (!%p188_p2), 7424 }
   0x6   : > { %191 = sbr.rel (%p188_p2) target bundleno = 625 (0x271), region = 40  ;;  %v3227_v1 = vld [vmem:[%s4161_s1 + $0x40] sm:$0xff] (!%p188_p2)   ;;  %2869 = vmatprep.subr.bf16.mxu0 (!%p188_p2), %v3226_v0  ;;  %v3231_v5 = vld [vmem:[%s4161_s1 + $0x48] sm:$0xff] (!%p188_p2)   ;;  %v3235_v9 = vld [vmem:[%s4161_s1 + $0x50] sm:$0xff] (!%p188_p2)   ;;  %vm737_vm1 = vcmask (!%p188_p2), 1046528   ;;  %vm3407_vm2 = vmmov (!%p188_p2), 0  }
   0x7   : > { %v3228_v2 = vld [vmem:[%s4161_s1 + $0x80] sm:$0xff] (!%p188_p2)   ;;  %2903 = vmatprep.subr.bf16.mxu1 (!%p188_p2), %v3227_v1  ;;  %v3232_v6 = vld [vmem:[%s4161_s1 + $0x88] sm:$0xff] (!%p188_p2)   ;;  %v3236_v10 = vld [vmem:[%s4161_s1 + $0x90] sm:$0xff] (!%p188_p2)  }
   0x8   : > { %v3229_v3 = vld [vmem:[%s4161_s1] sm:$0xff] (!%p188_p2)   ;;  %2870 = vmatpush3.bf16.msra.mxu0 (!%p188_p2), %v3228_v2  ;;  %v3233_v7 = vld [vmem:[%s4161_s1 + $0x8] sm:$0xff] (!%p188_p2)   ;;  %v3237_v11 = vld [vmem:[%s4161_s1 + $0x10] sm:$0xff] (!%p188_p2)  }
   0x9   : > { %2904 = vmatpush3.bf16.msra.mxu1 (!%p188_p2), %v3229_v3  ;;  %2871 = vmatprep.subr.bf16.mxu0 (!%p188_p2), %v3230_v4  ;;  %v3238_v12 = vld [vmem:[%s4161_s1 + $0xd8] sm:$0xff] (!%p188_p2)   ;;  %v3242_v16 = vld [vmem:[%s4161_s1 + $0xe0] sm:$0xff] (!%p188_p2)   ;;  %v3246_v20 = vld [vmem:[%s4161_s1 + $0xe8] sm:$0xff] (!%p188_p2)  }
   0xa   : > { %2905 = vmatprep.subr.bf16.mxu1 (!%p188_p2), %v3231_v5  ;;  %v3239_v13 = vld [vmem:[%s4161_s1 + $0x58] sm:$0xff] (!%p188_p2)   ;;  %v3243_v17 = vld [vmem:[%s4161_s1 + $0x60] sm:$0xff] (!%p188_p2)   ;;  %v3247_v21 = vld [vmem:[%s4161_s1 + $0x68] sm:$0xff] (!%p188_p2)  }
   0xb   : > { %v3240_v14 = vld [vmem:[%s4161_s1 + $0x98] sm:$0xff] (!%p188_p2)   ;;  %v3244_v18 = vld [vmem:[%s4161_s1 + $0xa0] sm:$0xff] (!%p188_p2)   ;;  %v3248_v22 = vld [vmem:[%s4161_s1 + $0xa8] sm:$0xff] (!%p188_p2)  }
   0xc   : > { %2872 = vmatpush3.bf16.msra.mxu0 (!%p188_p2), %v3232_v6  ;;  %v3241_v15 = vld [vmem:[%s4161_s1 + $0x18] sm:$0xff] (!%p188_p2)   ;;  %v3245_v19 = vld [vmem:[%s4161_s1 + $0x20] sm:$0xff] (!%p188_p2)   ;;  %v3249_v23 = vld [vmem:[%s4161_s1 + $0x28] sm:$0xff] (!%p188_p2)  }
   0xd   : > { %2906 = vmatpush3.bf16.msra.mxu1 %v3233_v7  ;;  %2873 = vmatprep.subr.bf16.mxu0 %v3234_v8  ;;  %s4167_s19 = smov (!%p215_p3, %s2430_s19), 1  ;;  %v3250_v24 = vld [vmem:[%s4161_s1 + $0xf0] sm:$0xff]   ;;  %v3254_v28 = vld [vmem:[%s4161_s1 + $0xf8] sm:$0xff]   ;;  %v3262_v40 = vld [vmem:[%s4161_s1 + $0x140] sm:$0xff]  }
   0xe   : > { %2907 = vmatprep.subr.bf16.mxu1 %v3235_v9  ;;  %v3251_v25 = vld [vmem:[%s4161_s1 + $0x70] sm:$0xff]   ;;  %s3214_s26 = smul.u32 80, %s4167_s19  ;;  %v3255_v29 = vld [vmem:[%s4161_s1 + $0x78] sm:$0xff]   ;;  %v3264_v45 = vld [vmem:[%s4161_s1 + $0x1c0] sm:$0xff]  }
   0xf   : > { %v3252_v26 = vld [vmem:[%s4161_s1 + $0xb0] sm:$0xff]   ;;  %v3256_v30 = vld [vmem:[%s4161_s1 + $0xb8] sm:$0xff]   ;;  %v3263_v52 = vld [vmem:[%s4161_s1 + $0x100] sm:$0xff]   ;;  %s3215_s15 = smul.u32 48, %s4167_s19 }
  0x10   : > { %2874 = vmatpush3.bf16.msra.mxu0 %v3236_v10  ;;  %v3253_v27 = vld [vmem:[%s4161_s1 + $0x30] sm:$0xff]   ;;  %s3546_s12 = scalar_lea.vmem %s4160_s0, %s3214_s26  ;;  %v3257_v31 = vld [vmem:[%s4161_s1 + $0x38] sm:$0xff]   ;;  %v3265_v53 = vld [vmem:[%s4161_s1 + $0x180] sm:$0xff]  }
  0x11   : > { %2908 = vmatpush3.bf16.msra.mxu1 %v3237_v11  ;;  %2875 = vmatprep.subr.bf16.mxu0 %v3238_v12  ;;  %v226_v32 = vld [vmem:[%s3546_s12] sm:$0xff]  ;;  %v3556_v33 = vld [vmem:[%s3546_s12 + $0x8] sm:$0xff]  ;;  %v3559_v34 = vld [vmem:[%s3546_s12 + $0x10] sm:$0xff]  ;;  %s224_s22 = scalar_lea.vmem %s4165_s5, %s3215_s15 }
  0x12   : > { %2909 = vmatprep.subr.bf16.mxu1 %v3239_v13  ;;  %v3562_v35 = vld [vmem:[%s3546_s12 + $0x18] sm:$0xff]  ;;  %v3565_v36 = vcombine.high %v226_v32, %v3556_v33  ;;  %v3568_v37 = vcombine.low %v226_v32, %v3556_v33  ;;  %v3266_v56 = vld [vmem:[%s4161_s1 + $0x148] sm:$0xff]   ;;  %v3270_v62 = vld [vmem:[%s4161_s1 + $0x150] sm:$0xff]  }
  0x13   : > { %v3572_v38 = vcombine.high %v3559_v34, %v3562_v35  ;;  %v3576_v39 = vcombine.low %v3559_v34, %v3562_v35  ;;  %v3268_v59 = vld [vmem:[%s4161_s1 + $0x1c8] sm:$0xff]   ;;  %v3272_v63 = vld [vmem:[%s4161_s1 + $0x1d0] sm:$0xff]   ;;  %v3629_v4 = vld [vmem:[%s3546_s12 + $0x20] sm:$0xff] }
  0x14   : > { %2876 = vmatpush3.bf16.msra.mxu0 %v3240_v14  ;;  %v343_v41 = vshrl.u32 %v3565_v36, 16  ;;  %v345_v42 = vshll.u32 %v3565_v36, 16  ;;  %679 = vmatprep.mubr.bf16.mxu1 %v3565_v36  ;;  %v331_v43 = vshrl.u32 %v3568_v37, 16  ;;  %v333_v44 = vshll.u32 %v3568_v37, 16  ;;  %v3269_v60 = vld [vmem:[%s4161_s1 + $0x188] sm:$0xff]   ;;  %v3273_v1 = vld [vmem:[%s4161_s1 + $0x190] sm:$0xff]  }
  0x15   : > { %2910 = vmatpush3.bf16.msra.mxu1 %v3241_v15  ;;  %2877 = vmatprep.subr.bf16.mxu0 %v3242_v16  ;;  %v350_v46 = vshll.u32 %v3572_v38, 16  ;;  %v338_v47 = vshll.u32 %v3576_v39, 16  ;;  %v3267_v61 = vld [vmem:[%s4161_s1 + $0x108] sm:$0xff]   ;;  %v362_v0 = vshrl.u32 %v3572_v38, 16  ;;  %v354_v2 = vshrl.u32 %v3576_v39, 16  ;;  %v3271_v3 = vld [vmem:[%s4161_s1 + $0x110] sm:$0xff]  }
  0x16   : > { %2911 = vmatprep.subr.bf16.mxu1 %v3243_v17  ;;  %v347_v48 = vrot.slane %v345_v42, 1  ;;  %v335_v49 = vrot.slane %v333_v44, 1  ;;  %v3632_v5 = vld [vmem:[%s3546_s12 + $0x28] sm:$0xff]  ;;  %v3274_v6 = vld [vmem:[%s4161_s1 + $0x158] sm:$0xff]   ;;  %v3656_v15 = vcombine.high %v3556_v33, %v3559_v34 }
  0x17   : > { %v352_v50 = vrot.slane %v350_v46, 1  ;;  %v340_v51 = vrot.slane %v338_v47, 1  ;;  %v3639_v7 = vcombine.high %v3629_v4, %v3632_v5  ;;  %v3643_v8 = vcombine.low %v3629_v4, %v3632_v5  ;;  %v3278_v9 = vld [vmem:[%s4161_s1 + $0x1d8] sm:$0xff]   ;;  %v3288_v32 = vld [vmem:[%s4161_s1 + $0x1e8] sm:$0xff]  }
  0x18   : > { %2878 = vmatpush3.bf16.msra.mxu0 %v3244_v18  ;;  %v348_v54 = vor.u32 %v347_v48, %v343_v41  ;;  %v336_v55 = vor.u32 %v335_v49, %v331_v43  ;;  %v3279_v14 = vld [vmem:[%s4161_s1 + $0x198] sm:$0xff]   ;;  %v3286_v43 = vld [vmem:[%s4161_s1 + $0x128] sm:$0xff]   ;;  %v3290_v48 = vld [vmem:[%s4161_s1 + $0x170] sm:$0xff]  }
  0x19   : > { %2912 = vmatpush3.bf16.msra.mxu1 %v3245_v19  ;;  %2879 = vmatprep.subr.bf16.mxu0 %v3246_v20  ;;  %v364_v10 = vor.u32 %v362_v0, %v352_v50  ;;  %v366_v11 = vshll.u32 %v3639_v7, 16  ;;  %v356_v12 = vor.u32 %v354_v2, %v340_v51  ;;  %v358_v13 = vshll.u32 %v3643_v8, 16  ;;  %v3276_v17 = vld [vmem:[%s4161_s1 + $0x118] sm:$0xff]   ;;  %v3280_v19 = vld [vmem:[%s4161_s1 + $0x160] sm:$0xff]   ;;  %v3292_v49 = vld [vmem:[%s4161_s1 + $0x1f0] sm:$0xff]  }
  0x1a   : > { %2913 = vmatprep.subr.bf16.mxu1 %v3247_v21  ;;  %v353_v57 = vsel %vm329_vm0, %v348_v54, %v352_v50  ;;  %v341_v58 = vsel %vm329_vm0, %v336_v55, %v340_v51  ;;  %v3291_v54 = vld [vmem:[%s4161_s1 + $0x130] sm:$0xff]   ;;  %v3294_v55 = vld [vmem:[%s4161_s1 + $0x178] sm:$0xff]   ;;  %v3762_v0 = vcombine.high %v3562_v35, %v3629_v4  ;;  %v3304_v2 = vld [vmem:[%s4161_s1 + $0x248] sm:$0xff]  }
  0x1b   : > { %520 = vmatprep.mubr.bf16.mxu0 %v353_v57  ;;  %v368_v16 = vrot.slane %v366_v11, 1  ;;  %v360_v18 = vrot.slane %v358_v13, 1  ;;  %v3297_v57 = vld [vmem:[%s4161_s1 + $0x1b8] sm:$0xff]   ;;  %v3790_v11 = vrot.slane %v3643_v8, 1  ;;  %v3798_v13 = vcombine.low %v3562_v35, %v3629_v4 }
  0x1c   : > { %2880 = vmatpush3.bf16.msra.mxu0 %v3248_v22  ;;  %v3282_v22 = vld [vmem:[%s4161_s1 + $0x1e0] sm:$0xff]   ;;  %v1172_v35 = vshrl.u32 %v3656_v15, 16 }
  0x1d   : > { %2914 = vmatpush3.bf16.msra.mxu1 %v3249_v23  ;;  %2881 = vmatprep.subr.bf16.mxu0 %v3250_v24  ;;  %v3665_v20 = vsel %vm329_vm0, %v364_v10, %v368_v16  ;;  %v3668_v21 = vsel %vm329_vm0, %v356_v12, %v360_v18  ;;  %v378_v23 = vshrl.u32 %v3639_v7, 16  ;;  %v3283_v24 = vld [vmem:[%s4161_s1 + $0x1a0] sm:$0xff]   ;;  %v3305_v10 = vld [vmem:[%s4161_s1 + $0x208] sm:$0xff]   ;;  %v3308_v12 = vld [vmem:[%s4161_s1 + $0x250] sm:$0xff]  }
  0x1e   : > { %2915 = vmatprep.subr.bf16.mxu1 %v3251_v25  ;;  %v370_v25 = vshrl.u32 %v3643_v8, 16 }
  0x1f   : > { %v3704_v41 = vor.u32 %v378_v23, %v368_v16  ;;  %v3312_v16 = vld [vmem:[%s4161_s1 + $0x2d0] sm:$0xff]   ;;  %v1416_v23 = vrot.slane %v3656_v15, 1 }
  0x20   : > { %2882 = vmatpush3.bf16.msra.mxu0 %v3252_v26  ;;  %v3281_v26 = vld [vmem:[%s4161_s1 + $0x120] sm:$0xff]   ;;  %v3710_v44 = vor.u32 %v370_v25, %v360_v18 }
  0x21   : > { %2916 = vmatpush3.bf16.msra.mxu1 %v3253_v27  ;;  %2883 = vmatprep.subr.bf16.mxu0 %v3254_v28  ;;  %v3685_v27 = vld [vmem:[%s3546_s12 + $0x30] sm:$0xff]  ;;  %v3284_v28 = vld [vmem:[%s4161_s1 + $0x168] sm:$0xff]  }
  0x22   : > { %2917 = vmatprep.subr.bf16.mxu1 %v3255_v29  ;;  %v3693_v29 = vcombine.high %v3685_v27, %v3685_v27  ;;  %v3807_v18 = vcombine.high %v3632_v5, %v3685_v27 }
  0x24   : > { %2884 = vmatpush3.bf16.msra.mxu0 %v3256_v30  ;;  %v3697_v30 = vcombine.low %v3685_v27, %v3685_v27  ;;  %v382_v42 = vshll.u32 %v3693_v29, 16 }
  0x25   : > { %2918 = vmatpush3.bf16.msra.mxu1 %v3257_v31  ;;  %2937 = vmatprep.subr.bf16.mxu0 %v3262_v40  ;;  %v741_v31 = vrot.slane %v3565_v36, 1  ;;  %v742_v40 = vrot.slane %v3572_v38, 1  ;;  %v3289_v36 = vld [vmem:[%s4161_s1 + $0x1a8] sm:$0xff]  }
  0x26   : > { %2971 = vmatprep.subr.bf16.mxu1 %v3264_v45  ;;  %v374_v45 = vshll.u32 %v3697_v30, 16  ;;  %v384_v46 = vrot.slane %v382_v42, 1  ;;  %v3318_v42 = vld [vmem:[%s4161_s1 + $0x260] sm:$0xff]  }
  0x27   : > { %521 = vmatmul.mubr.bf16.vlgmr.msra.gmra.mrb[0].mxu0 %v341_v58  ;;  %v738_v58 = vrot.slane %v3568_v37, 1 }
  0x28   : > { %680 = vmatmul.mubr.bf16.vlgmr.msra.gmra.mrb[0].mxu1 %v3568_v37  ;;  %2938 = vmatpush3.bf16.msra.mxu0 %v3263_v52  ;;  %v376_v47 = vrot.slane %v374_v45, 1  ;;  %v385_v50 = vsel %vm329_vm0, %v3704_v41, %v384_v46  ;;  %v3293_v52 = vld [vmem:[%s4161_s1 + $0x1b0] sm:$0xff]   ;;  %v3302_v37 = vld [vmem:[%s4161_s1 + $0x2c0] sm:$0xff]  }
  0x29   : > { %687 = vmatprep.mubr.bf16.mxu1 %v3572_v38  ;;  %2972 = vmatpush3.bf16.msra.mxu1 %v3265_v53  ;;  %v743_v53 = vsel %vm737_vm1, %v741_v31, %v742_v40  ;;  %v1417_v31 = vrot.slane %v3762_v0, 1  ;;  %v3322_v45 = vld [vmem:[%s4161_s1 + $0x2e0] sm:$0xff]  }
  0x2a   : > { %2973 = vmatprep.subr.bf16.mxu1 %v3268_v59  ;;  %2939 = vmatprep.subr.bf16.mxu0 %v3266_v56  ;;  %v377_v51 = vsel %vm329_vm0, %v3710_v44, %v376_v47  ;;  %v3296_v56 = vld [vmem:[%s4161_s1 + $0x1f8] sm:$0xff]  }
  0x2b   : > { %528 = vmatprep.mubr.bf16.mxu0 %v3665_v20  ;;  %v3295_v59 = vld [vmem:[%s4161_s1 + $0x138] sm:$0xff]   ;;  %v1418_v47 = vsel %vm737_vm1, %v1416_v23, %v1417_v31  ;;  %v3339_v23 = vld [vmem:[%s4161_s1 + $0x380] sm:$0xff]  }
  0x2c   : > { %2940 = vmatpush3.bf16.msra.mxu0 %v3267_v61  ;;  %v3298_v61 = vld [vmem:[%s4161_s1 + $0x240] sm:$0xff]  }
  0x2d   : > { %2974 = vmatpush3.bf16.msra.mxu1 %v3269_v60  ;;  %2941 = vmatprep.subr.bf16.mxu0 %v3270_v62  ;;  %v739_v60 = vrot.slane %v3576_v39, 1  ;;  %v3752_v62 = vcombine.low %v3556_v33, %v3559_v34  ;;  %v3300_v34 = vld [vmem:[%s4161_s1 + $0x200] sm:$0xff]  }
  0x2e   : > { %2975 = vmatprep.subr.bf16.mxu1 %v3272_v63  ;;  %v3758_v63 = vrot.slane %v3639_v7, 1 }
  0x2f   : > { %529 = vmatmul.mubr.bf16.gmra.mrb[4].mxu0 %v3668_v21  ;;  %v740_v33 = vsel %vm737_vm1, %v738_v58, %v739_v60  ;;  %v3815_v4 = vsel %vm737_vm1, %v739_v60, %v3790_v11  ;;  %v3330_v58 = vld [vmem:[%s4161_s1 + $0x2f0] sm:$0xff]  }
  0x30   : > { %688 = vmatmul.mubr.bf16.gmra.mrb[4].mxu1 %v3576_v39  ;;  %2942 = vmatpush3.bf16.msra.mxu0 %v3271_v3  ;;  %v3306_v3 = vld [vmem:[%s4161_s1 + $0x2c8] sm:$0xff]   ;;  %v3331_v60 = vld [vmem:[%s4161_s1 + $0x2b0] sm:$0xff]  }
  0x31   : > { %2976 = vmatpush3.bf16.msra.mxu1 %v3273_v1  ;;  %695 = vmatprep.mubr.bf16.mxu1 %v3639_v7  ;;  %v3303_v1 = vld [vmem:[%s4161_s1 + $0x280] sm:$0xff]  }
  0x32   : > { %2977 = vmatprep.subr.bf16.mxu1 %v3278_v9  ;;  %2943 = vmatprep.subr.bf16.mxu0 %v3274_v6  ;;  %v3780_v6 = vsel %vm737_vm1, %v742_v40, %v3758_v63  ;;  %v3307_v9 = vld [vmem:[%s4161_s1 + $0x288] sm:$0xff]   ;;  %v748_v40 = vrot.slane %v3697_v30, 1  ;;  %v3323_v30 = vld [vmem:[%s4161_s1 + $0x2a0] sm:$0xff]  }
  0x33   : > { %536 = vmatprep.mubr.bf16.mxu0 %v385_v50  ;;  %v1162_v50 = vshll.u32 %v3752_v62, 16 }
  0x34   : > { %2944 = vmatpush3.bf16.msra.mxu0 %v3276_v17  ;;  %v750_v17 = vrot.slane %v3693_v29, 1  ;;  %v3317_v29 = vld [vmem:[%s4161_s1 + $0x298] sm:$0xff]  }
  0x35   : > { %2978 = vmatpush3.bf16.msra.mxu1 %v3279_v14  ;;  %2945 = vmatprep.subr.bf16.mxu0 %v3280_v19  ;;  %v1174_v14 = vshll.u32 %v3656_v15, 16  ;;  %v3313_v19 = vld [vmem:[%s4161_s1 + $0x290] sm:$0xff]  }
  0x36   : > { %2979 = vmatprep.subr.bf16.mxu1 %v3282_v22  ;;  %v3310_v22 = vld [vmem:[%s4161_s1 + $0x210] sm:$0xff]  }
  0x37   : > { %537 = vmatmul.mubr.bf16.gmra.mrb[8].mxu0 %v377_v51  ;;  %v1176_v25 = vrot.slane %v1174_v14, 1  ;;  %v3326_v51 = vld [vmem:[%s4161_s1 + $0x2e8] sm:$0xff]  }
  0x38   : > { %696 = vmatmul.mubr.bf16.gmra.mrb[8].mxu1 %v3643_v8  ;;  %2946 = vmatpush3.bf16.msra.mxu0 %v3281_v26  ;;  %v3316_v26 = vld [vmem:[%s4161_s1 + $0x2d8] sm:$0xff]  }
  0x39   : > { %1090 = vmatprep.mubr.bf16.mxu1 %v3656_v15  ;;  %2980 = vmatpush3.bf16.msra.mxu1 %v3283_v24  ;;  %v3314_v24 = vld [vmem:[%s4161_s1 + $0x258] sm:$0xff]   ;;  %v1179_v15 = vshll.u32 %v3762_v0, 16 }
  0x3a   : > { %2981 = vmatprep.subr.bf16.mxu1 %v3288_v32  ;;  %2947 = vmatprep.subr.bf16.mxu0 %v3284_v28  ;;  %v751_v28 = vsel %vm737_vm1, %v3758_v63, %v750_v17  ;;  %v3315_v32 = vld [vmem:[%s4161_s1 + $0x218] sm:$0xff]  }
  0x3b   : > { %886 = vmatprep.mubr.bf16.mxu0 %v743_v53  ;;  %v1181_v46 = vrot.slane %v1179_v15, 1  ;;  %v3327_v53 = vld [vmem:[%s4161_s1 + $0x2a8] sm:$0xff]  }
  0x3c   : > { %2948 = vmatpush3.bf16.msra.mxu0 %v3286_v43  ;;  %v3846_v43 = vcombine.low %v3632_v5, %v3685_v27  ;;  %v749_v5 = vsel %vm737_vm1, %v3790_v11, %v748_v40  ;;  %v3341_v40 = vld [vmem:[%s4161_s1 + $0x308] sm:$0xff]  }
  0x3d   : > { %2982 = vmatpush3.bf16.msra.mxu1 %v3289_v36  ;;  %2949 = vmatprep.subr.bf16.mxu0 %v3290_v48  ;;  %v1177_v36 = vor.u32 %v1176_v25, %v1172_v35  ;;  %v3320_v48 = vld [vmem:[%s4161_s1 + $0x220] sm:$0xff]  }
  0x3e   : > { %2983 = vmatprep.subr.bf16.mxu1 %v3292_v49  ;;  %v3324_v49 = vld [vmem:[%s4161_s1 + $0x268] sm:$0xff]   ;;  %v1187_v15 = vshll.u32 %v3846_v43, 16 }
  0x40   : > { %2950 = vmatpush3.bf16.msra.mxu0 %v3291_v54  ;;  %v3325_v54 = vld [vmem:[%s4161_s1 + $0x228] sm:$0xff]  }
  0x41   : > { %2984 = vmatpush3.bf16.msra.mxu1 %v3293_v52  ;;  %2951 = vmatprep.subr.bf16.mxu0 %v3294_v55  ;;  %v1182_v52 = vsel %vm329_vm0, %v1177_v36, %v1181_v46  ;;  %v1160_v55 = vshrl.u32 %v3752_v62, 16  ;;  %v3344_v36 = vld [vmem:[%s4161_s1 + $0x350] sm:$0xff]  }
  0x42   : > { %2985 = vmatprep.subr.bf16.mxu1 %v3296_v56  ;;  %v3328_v56 = vld [vmem:[%s4161_s1 + $0x270] sm:$0xff]  }
  0x44   : > { %2952 = vmatpush3.bf16.msra.mxu0 %v3295_v59  ;;  %v1167_v59 = vshll.u32 %v3798_v13, 16 }
  0x45   : > { %2986 = vmatpush3.bf16.msra.mxu1 %v3297_v57  ;;  %3005 = vmatprep.subr.bf16.mxu0 %v3298_v61  ;;  %v1164_v57 = vrot.slane %v1162_v50, 1  ;;  %v1413_v61 = vrot.slane %v3752_v62, 1  ;;  %v1199_v50 = vshrl.u32 %v3846_v43, 16 }
  0x46   : > { %3039 = vmatprep.subr.bf16.mxu1 %v3302_v37  ;;  %v3329_v37 = vld [vmem:[%s4161_s1 + $0x230] sm:$0xff]   ;;  %v1169_v14 = vrot.slane %v1167_v59, 1 }
  0x47   : > { %887 = vmatmul.mubr.bf16.vlgmr.msra.gmra.mrb[12].mxu0 %v740_v33  ;;  %v3332_v33 = vld [vmem:[%s4161_s1 + $0x278] sm:$0xff]  }
  0x48   : > { %1091 = vmatmul.mubr.bf16.vlgmr.msra.gmra.mrb[12].mxu1 %v3752_v62  ;;  %3006 = vmatpush3.bf16.msra.mxu0 %v3300_v34  ;;  %v1191_v34 = vshrl.u32 %v3762_v0, 16  ;;  %v3334_v62 = vld [vmem:[%s4161_s1 + $0x2f8] sm:$0xff]  }
  0x49   : > { %3040 = vmatpush3.bf16.msra.mxu1 %v3303_v1  ;;  %1098 = vmatprep.mubr.bf16.mxu1 %v3762_v0  ;;  %v1414_v1 = vrot.slane %v3798_v13, 1  ;;  %v3342_v0 = vld [vmem:[%s4161_s1 + $0x3c8] sm:$0xff]  }
  0x4a   : > { %3041 = vmatprep.subr.bf16.mxu1 %v3306_v3  ;;  %3007 = vmatprep.subr.bf16.mxu0 %v3304_v2  ;;  %v1195_v2 = vshll.u32 %v3807_v18, 16  ;;  %v3335_v3 = vld [vmem:[%s4161_s1 + $0x2b8] sm:$0xff]   ;;  %v1193_v35 = vor.u32 %v1191_v34, %v1181_v46  ;;  %v3355_v34 = vld [vmem:[%s4161_s1 + $0x320] sm:$0xff]  }
  0x4b   : > { %894 = vmatprep.mubr.bf16.mxu0 %v3780_v6  ;;  %v1415_v17 = vsel %vm737_vm1, %v1413_v61, %v1414_v1 }
  0x4c   : > { %3008 = vmatpush3.bf16.msra.mxu0 %v3305_v10  ;;  %v3333_v10 = vld [vmem:[%s4161_s1 + $0x238] sm:$0xff]  }
  0x4d   : > { %3042 = vmatpush3.bf16.msra.mxu1 %v3307_v9  ;;  %3009 = vmatprep.subr.bf16.mxu0 %v3308_v12  ;;  %v1421_v9 = vrot.slane %v3807_v18, 1  ;;  %v1165_v12 = vor.u32 %v1164_v57, %v1160_v55  ;;  %v3352_v55 = vld [vmem:[%s4161_s1 + $0x398] sm:$0xff]  }
  0x4e   : > { %3043 = vmatprep.subr.bf16.mxu1 %v3312_v16  ;;  %v3336_v16 = vld [vmem:[%s4161_s1 + $0x340] sm:$0xff]  }
  0x4f   : > { %895 = vmatmul.mubr.bf16.gmra.mrb[16].mxu0 %v3815_v4  ;;  %v1422_v25 = vsel %vm737_vm1, %v1417_v31, %v1421_v9  ;;  %v1419_v31 = vrot.slane %v3846_v43, 1 }
  0x50   : > { %1099 = vmatmul.mubr.bf16.gmra.mrb[16].mxu1 %v3798_v13  ;;  %3010 = vmatpush3.bf16.msra.mxu0 %v3310_v22  ;;  %v1197_v22 = vrot.slane %v1195_v2, 1  ;;  %v3356_v2 = vld [vmem:[%s4161_s1 + $0x3e0] sm:$0xff]  }
  0x51   : > { %3044 = vmatpush3.bf16.msra.mxu1 %v3313_v19  ;;  %1106 = vmatprep.mubr.bf16.mxu1 %v3807_v18  ;;  %v3338_v19 = vld [vmem:[%s4161_s1 + $0x3c0] sm:$0xff]   ;;  %v1420_v46 = vsel %vm737_vm1, %v1414_v1, %v1419_v31 }
  0x52   : > { %3045 = vmatprep.subr.bf16.mxu1 %v3316_v26  ;;  %3011 = vmatprep.subr.bf16.mxu0 %v3314_v24  ;;  %v1183_v24 = vshrl.u32 %v3798_v13, 16  ;;  %v1170_v26 = vsel %vm329_vm0, %v1165_v12, %v1169_v14  ;;  %v3340_v13 = vld [vmem:[%s4161_s1 + $0x348] sm:$0xff]  }
  0x53   : > { %902 = vmatprep.mubr.bf16.mxu0 %v751_v28  ;;  %v3337_v28 = vld [vmem:[%s4161_s1 + $0x300] sm:$0xff]  }
  0x54   : > { %3012 = vmatpush3.bf16.msra.mxu0 %v3315_v32  ;;  %v3343_v32 = vld [vmem:[%s4161_s1 + $0x388] sm:$0xff]  }
  0x55   : > { %3046 = vmatpush3.bf16.msra.mxu1 %v3317_v29  ;;  %3013 = vmatprep.subr.bf16.mxu0 %v3318_v42  ;;  %v1198_v29 = vsel %vm329_vm0, %v1193_v35, %v1197_v22  ;;  %v1185_v42 = vor.u32 %v1183_v24, %v1169_v14  ;;  %v3357_v14 = vld [vmem:[%s4161_s1 + $0x3a0] sm:$0xff]   ;;  %v3359_v35 = vld [vmem:[%s4161_s1 + $0x328] sm:$0xff]  }
  0x56   : > { %3047 = vmatprep.subr.bf16.mxu1 %v3322_v45  ;;  %v1189_v45 = vrot.slane %v1187_v15, 1 }
  0x57   : > { %903 = vmatmul.mubr.bf16.gmra.mrb[20].mxu0 %v749_v5  ;;  %v1207_v5 = vshrl.u32 %v3807_v18, 16  ;;  %v3358_v18 = vld [vmem:[%s4161_s1 + $0x368] sm:$0xff]  }
  0x58   : > { %1107 = vmatmul.mubr.bf16.gmra.mrb[20].mxu1 %v3846_v43  ;;  %3014 = vmatpush3.bf16.msra.mxu0 %v3320_v48  ;;  %v1190_v48 = vsel %vm329_vm0, %v1185_v42, %v1189_v45  ;;  %v3349_v43 = vld [vmem:[%s4161_s1 + $0x318] sm:$0xff]   ;;  %v3373_v42 = vld [vmem:[%s4161_s1 + $0x408] sm:$0xff]  }
  0x59   : > { %3048 = vmatpush3.bf16.msra.mxu1 %v3323_v30  ;;  %1561 = vmatprep.mubr.bf16.mxu1 %v1418_v47  ;;  %v3346_v30 = vld [vmem:[%s4161_s1 + $0x3d0] sm:$0xff]   ;;  %v1209_v57 = vor.u32 %v1207_v5, %v1197_v22 }
  0x5a   : > { %3049 = vmatprep.subr.bf16.mxu1 %v3326_v51  ;;  %3015 = vmatprep.subr.bf16.mxu0 %v3324_v49  ;;  %v3347_v47 = vld [vmem:[%s4161_s1 + $0x390] sm:$0xff]   ;;  %v3348_v51 = vld [vmem:[%s4161_s1 + $0x358] sm:$0xff]  }
  0x5b   : > { %1349 = vmatprep.mubr.bf16.mxu0 %v1182_v52  ;;  %v3345_v49 = vld [vmem:[%s4161_s1 + $0x310] sm:$0xff]   ;;  %v3350_v52 = vld [vmem:[%s4161_s1 + $0x3d8] sm:$0xff]  }
  0x5c   : > { %3016 = vmatpush3.bf16.msra.mxu0 %v3325_v54 }
  0x5d   : > { %3050 = vmatpush3.bf16.msra.mxu1 %v3327_v53  ;;  %3017 = vmatprep.subr.bf16.mxu0 %v3328_v56  ;;  %v233_v53 = vld [vmem:[%s3546_s12 + $0x38] sm:$0xff] }
  0x5e   : > { %3051 = vmatprep.subr.bf16.mxu1 %v3330_v58  ;;  %v2644_v54 = vcombine.high %v233_v53, %v233_v53  ;;  %v2643_v56 = vcombine.low %v233_v53, %v233_v53  ;;  %v1201_v58 = vor.u32 %v1199_v50, %v1189_v45  ;;  %v3973_v59 = vcombine.high %v3685_v27, %v233_v53 }
  0x60   : > { %3018 = vmatpush3.bf16.msra.mxu0 %v3329_v37  ;;  %v1203_v61 = vshll.u32 %v2643_v56, 16  ;;  %v3354_v37 = vld [vmem:[%s4161_s1 + $0x360] sm:$0xff]   ;;  %v1425_v1 = vrot.slane %v2644_v54, 1  ;;  %v1844_v45 = vshrl.u32 %v3973_v59, 16 }
  0x61   : > { %3052 = vmatpush3.bf16.msra.mxu1 %v3331_v60  ;;  %3019 = vmatprep.subr.bf16.mxu0 %v3332_v33  ;;  %v1211_v60 = vshll.u32 %v2644_v54, 16  ;;  %v3979_v33 = vcombine.low %v3685_v27, %v233_v53  ;;  %v3379_v53 = vld [vmem:[%s4161_s1 + $0x418] sm:$0xff]  }
  0x62   : > { %3053 = vmatprep.subr.bf16.mxu1 %v3334_v62  ;;  %v1423_v62 = vrot.slane %v2643_v56, 1  ;;  %v1426_v12 = vsel %vm737_vm1, %v1421_v9, %v1425_v1 }
  0x63   : > { %v1827_v9 = vshll.u32 %v3979_v33, 16 }
  0x64   : > { %3020 = vmatpush3.bf16.msra.mxu0 %v3333_v10  ;;  %v1205_v10 = vrot.slane %v1203_v61, 1  ;;  %v1424_v27 = vsel %vm737_vm1, %v1419_v31, %v1423_v62  ;;  %v3370_v31 = vld [vmem:[%s4161_s1 + $0x440] sm:$0xff]   ;;  %v3388_v61 = vld [vmem:[%s4161_s1 + $0x478] sm:$0xff]  }
  0x65   : > { %3054 = vmatpush3.bf16.msra.mxu1 %v3335_v3  ;;  %3073 = vmatprep.subr.bf16.mxu0 %v3336_v16  ;;  %v1213_v3 = vrot.slane %v1211_v60, 1  ;;  %v1832_v16 = vshll.u32 %v3973_v59, 16  ;;  %v1829_v24 = vrot.slane %v1827_v9, 1  ;;  %v3387_v60 = vld [vmem:[%s4161_s1 + $0x430] sm:$0xff]  }
  0x66   : > { %3107 = vmatprep.subr.bf16.mxu1 %v3338_v19  ;;  %v1206_v19 = vsel %vm329_vm0, %v1201_v58, %v1205_v10  ;;  %v3386_v58 = vld [vmem:[%s4161_s1 + $0x470] sm:$0xff]  }
  0x67   : > { %1350 = vmatmul.mubr.bf16.vlgmr.msra.gmra.mrb[24].mxu0 %v1170_v26  ;;  %v1834_v22 = vrot.slane %v1832_v16, 1  ;;  %v1830_v15 = vsel %vm329_vm0, %v3710_v44, %v1829_v24  ;;  %v3366_v44 = vld [vmem:[%s4161_s1 + $0x378] sm:$0xff]  }
  0x68   : > { %1562 = vmatmul.mubr.bf16.vlgmr.msra.gmra.mrb[24].mxu1 %v1415_v17  ;;  %3074 = vmatpush3.bf16.msra.mxu0 %v3337_v28  ;;  %v1214_v17 = vsel %vm329_vm0, %v1209_v57, %v1213_v3  ;;  %v3362_v28 = vld [vmem:[%s4161_s1 + $0x370] sm:$0xff]   ;;  %v3385_v57 = vld [vmem:[%s4161_s1 + $0x428] sm:$0xff]  }
  0x69   : > { %3108 = vmatpush3.bf16.msra.mxu1 %v3339_v23  ;;  %1569 = vmatprep.mubr.bf16.mxu1 %v1422_v25  ;;  %v3360_v23 = vld [vmem:[%s4161_s1 + $0x3e8] sm:$0xff]   ;;  %v1835_v26 = vsel %vm329_vm0, %v3704_v41, %v1834_v22  ;;  %v3365_v41 = vld [vmem:[%s4161_s1 + $0x3b0] sm:$0xff]   ;;  %v1846_v5 = vor.u32 %v1844_v45, %v1834_v22 }
  0x6a   : > { %3109 = vmatprep.subr.bf16.mxu1 %v3342_v0  ;;  %3075 = vmatprep.subr.bf16.mxu0 %v3340_v13  ;;  %v3361_v25 = vld [vmem:[%s4161_s1 + $0x3a8] sm:$0xff]   ;;  %v3363_v13 = vld [vmem:[%s4161_s1 + $0x330] sm:$0xff]   ;;  %v3368_v0 = vld [vmem:[%s4161_s1 + $0x3f8] sm:$0xff]  }
  0x6b   : > { %1357 = vmatprep.mubr.bf16.mxu0 %v1198_v29  ;;  %v3369_v29 = vld [vmem:[%s4161_s1 + $0x3b8] sm:$0xff]  }
  0x6c   : > { %3076 = vmatpush3.bf16.msra.mxu0 %v3341_v40  ;;  %v3372_v40 = vld [vmem:[%s4161_s1 + $0x448] sm:$0xff]  }
  0x6d   : > { %3110 = vmatpush3.bf16.msra.mxu1 %v3343_v32  ;;  %3077 = vmatprep.subr.bf16.mxu0 %v3344_v36  ;;  %v3371_v32 = vld [vmem:[%s4161_s1 + $0x400] sm:$0xff]   ;;  %v3374_v36 = vld [vmem:[%s4161_s1 + $0x450] sm:$0xff]  }
  0x6e   : > { %3111 = vmatprep.subr.bf16.mxu1 %v3346_v30 }
  0x6f   : > { %1358 = vmatmul.mubr.bf16.gmra.mrb[28].mxu0 %v1190_v48 }
  0x70   : > { %1570 = vmatmul.mubr.bf16.gmra.mrb[28].mxu1 %v1420_v46  ;;  %3078 = vmatpush3.bf16.msra.mxu0 %v3345_v49  ;;  %v234_v46 = vld [vmem:[%s3546_s12 + $0x40] sm:$0xff]  ;;  %v3378_v49 = vld [vmem:[%s4161_s1 + $0x458] sm:$0xff]  }
  0x71   : > { %3112 = vmatpush3.bf16.msra.mxu1 %v3347_v47  ;;  %3079 = vmatprep.subr.bf16.mxu0 %v3348_v51  ;;  %v2792_v30 = vcombine.high %v234_v46, %v234_v46  ;;  %v1836_v47 = vshrl.u32 %v3979_v33, 16 }
  0x72   : > { %3113 = vmatprep.subr.bf16.mxu1 %v3350_v52  ;;  %1577 = vmatprep.mubr.bf16.mxu1 %v1426_v12  ;;  %v3393_v12 = vld [vmem:[%s4163_s3 + $0x18] sm:$0xff]  }
  0x73   : > { %1365 = vmatprep.mubr.bf16.mxu0 %v1214_v17  ;;  %v1848_v48 = vshll.u32 %v2792_v30, 16  ;;  %v1838_v52 = vor.u32 %v1836_v47, %v1829_v24  ;;  %v2054_v62 = vrot.slane %v2792_v30, 1 }
  0x74   : > { %3080 = vmatpush3.bf16.msra.mxu0 %v3349_v43  ;;  %v3384_v43 = vld [vmem:[%s4161_s1 + $0x468] sm:$0xff]  }
  0x75   : > { %3114 = vmatpush3.bf16.msra.mxu1 %v3352_v55  ;;  %3081 = vmatprep.subr.bf16.mxu0 %v3354_v37  ;;  %v1850_v50 = vrot.slane %v1848_v48, 1  ;;  %v3380_v55 = vld [vmem:[%s4161_s1 + $0x460] sm:$0xff]   ;;  %v2050_v37 = vrot.slane %v3973_v59, 1 }
  0x76   : > { %3115 = vmatprep.subr.bf16.mxu1 %v3356_v2 }
  0x77   : > { %1366 = vmatmul.mubr.bf16.gmra.mrb[32].mxu0 %v1206_v19  ;;  %v1851_v54 = vsel %vm329_vm0, %v1846_v5, %v1850_v50  ;;  %v2051_v1 = vsel %vm737_vm1, %v3758_v63, %v2050_v37  ;;  %v2055_v3 = vsel %vm737_vm1, %v2050_v37, %v2054_v62  ;;  %v3390_v63 = vld [vmem:[%s4163_s3] sm:$0xff]  }
  0x78   : > { %1578 = vmatmul.mubr.bf16.gmra.mrb[32].mxu1 %v1424_v27  ;;  %3082 = vmatpush3.bf16.msra.mxu0 %v3355_v34  ;;  %v2048_v34 = vrot.slane %v3979_v33, 1  ;;  %v3394_v19 = vld [vmem:[%s4163_s3 + $0x20] sm:$0xff]  }
  0x79   : > { %3116 = vmatpush3.bf16.msra.mxu1 %v3357_v14  ;;  %1757 = vmatprep.mubr.bf16.mxu0 %v3572_v38  ;;  %v3364_v38 = vld [vmem:[%s4161_s1 + $0x3f0] sm:$0xff]  }
  0x7a   : > { %3083 = vmatprep.subr.bf16.mxu0 %v3358_v18  ;;  %3117 = vmatprep.subr.bf16.mxu1 %v3360_v23  ;;  %v2049_v2 = vsel %vm737_vm1, %v3790_v11, %v2048_v34  ;;  %v3391_v11 = vld [vmem:[%s4163_s3 + $0x8] sm:$0xff]  }
  0x7b   : > { %1984 = vmatprep.mubr.bf16.mxu1 %v3665_v20  ;;  %v3367_v20 = vld [vmem:[%s4161_s1 + $0x338] sm:$0xff]   ;;  %v3395_v23 = vld [vmem:[%s4163_s3 + $0x28] sm:$0xff]  }
  0x7c   : > { %3084 = vmatpush3.bf16.msra.mxu0 %v3359_v35 }
  0x7d   : > { %3118 = vmatpush3.bf16.msra.mxu1 %v3361_v25  ;;  %3085 = vmatprep.subr.bf16.mxu0 %v3362_v28 }
  0x7e   : > { %3119 = vmatprep.subr.bf16.mxu1 %v3364_v38 }
  0x80   : > { %3086 = vmatpush3.bf16.msra.mxu0 %v3363_v13 }
  0x81   : > { %3120 = vmatpush3.bf16.msra.mxu1 %v3365_v41  ;;  %3087 = vmatprep.subr.bf16.mxu0 %v3366_v44 }
  0x82   : > { %3121 = vmatprep.subr.bf16.mxu1 %v3368_v0  ;;  %v3396_v0 = vld [vmem:[%s4163_s3 + $0x30] sm:$0xff]  }
  0x84   : > { %3088 = vmatpush3.bf16.msra.mxu0 %v3367_v20 }
  0x85   : > { %3122 = vmatpush3.bf16.msra.mxu1 %v3369_v29  ;;  %3141 = vmatprep.subr.bf16.mxu0 %v3370_v31 }
  0x87   : > { %1758 = vmatmul.mubr.bf16.vlgmr.msra.gmra.mrb[36].mxu0 %v3576_v39  ;;  %v3376_v39 = vld [vmem:[%s4161_s1 + $0x410] sm:$0xff]  }
  0x88   : > { %1985 = vmatmul.mubr.bf16.vlgmr.msra.gmra.mrb[36].mxu1 %v3668_v21  ;;  %3142 = vmatpush3.bf16.msra.mxu0 %v3371_v32  ;;  %v2791_v21 = vcombine.low %v234_v46, %v234_v46  ;;  %v3397_v32 = vld [vmem:[%s4163_s3 + $0x38] sm:$0xff]  }
  0x89   : > { %1992 = vmatprep.mubr.bf16.mxu1 %v1835_v26  ;;  %1765 = vmatprep.mubr.bf16.mxu0 %v3639_v7 }
  0x8a   : > { %3143 = vmatprep.subr.bf16.mxu0 %v3372_v40  ;;  %v1840_v7 = vshll.u32 %v2791_v21, 16  ;;  %v2052_v10 = vrot.slane %v2791_v21, 1 }
  0x8c   : > { %3144 = vmatpush3.bf16.msra.mxu0 %v3373_v42  ;;  %v1842_v51 = vrot.slane %v1840_v7, 1 }
  0x8d   : > { %3145 = vmatprep.subr.bf16.mxu0 %v3374_v36 }
  0x8e   : > { %v1843_v56 = vsel %vm329_vm0, %v1838_v52, %v1842_v51 }
  0x8f   : > { %1766 = vmatmul.mubr.bf16.gmra.mrb[40].mxu0 %v3643_v8  ;;  %v3382_v8 = vld [vmem:[%s4161_s1 + $0x420] sm:$0xff]  }
  0x90   : > { %1993 = vmatmul.mubr.bf16.gmra.mrb[40].mxu1 %v1830_v15  ;;  %3146 = vmatpush3.bf16.msra.mxu0 %v3376_v39 }
  0x91   : > { %1773 = vmatprep.mubr.bf16.mxu0 %v3973_v59  ;;  %3147 = vmatprep.subr.bf16.mxu0 %v3378_v49  ;;  %v2053_v59 = vsel %vm737_vm1, %v2048_v34, %v2052_v10 }
  0x92   : > { %2000 = vmatprep.mubr.bf16.mxu1 %v1851_v54 }
  0x94   : > { %3148 = vmatpush3.bf16.msra.mxu0 %v3379_v53 }
  0x95   : > { %3149 = vmatprep.subr.bf16.mxu0 %v3380_v55 }
  0x97   : > { %1774 = vmatmul.mubr.bf16.gmra.mrb[44].mxu0 %v3979_v33  ;;  %v3392_v33 = vld [vmem:[%s4163_s3 + $0x10] sm:$0xff]  }
  0x98   : > { %2001 = vmatmul.mubr.bf16.gmra.mrb[44].mxu1 %v1843_v56  ;;  %3150 = vmatpush3.bf16.msra.mxu0 %v3382_v8 }
  0x99   : > { %2188 = vmatprep.mubr.bf16.mxu0 %v3780_v6  ;;  %3151 = vmatprep.subr.bf16.mxu0 %v3384_v43  ;;  %v3389_v6 = vld [vmem:[%s4161_s1 + $0x438] sm:$0xff]  }
  0x9c   : > { %3152 = vmatpush3.bf16.msra.mxu0 %v3385_v57 }
  0x9d   : > { %3153 = vmatprep.subr.bf16.mxu0 %v3386_v58 }
  0xa0   : > { %3154 = vmatpush3.bf16.msra.mxu0 %v3387_v60 }
  0xa1   : > { %3155 = vmatprep.subr.bf16.mxu0 %v3388_v61 }
  0xa4   : > { %3156 = vmatpush3.bf16.msra.mxu0 %v3389_v6 }
  0xa7   : > { %2189 = vmatmul.mubr.bf16.vlgmr.msra.gmra.mrb[48].mxu0 %v3815_v4  ;;  %v3406_v4 = vmov 0.0  }
  0xa8   : > { %2196 = vmatprep.mubr.bf16.mxu0 %v2051_v1  ;;  %3186 = vmatprep.subr.bf16.mxu1 %v3406_v4 }
  0xa9   : > { %3187 = vmatpush3.bf16.msra.mxu1 %v3390_v63  ;;  %3202 = vmatprep.mubr.msk.bf16.mxu1 %vm3407_vm2, %v3406_v4 }
  0xaa   : > { %3188 = vmatprep.subr.bf16.mxu1 %v3406_v4 }
  0xad   : > { %3189 = vmatpush3.bf16.msra.mxu1 %v3391_v11 }
  0xae   : > { %3190 = vmatprep.subr.bf16.mxu1 %v3406_v4 }
  0xaf   : > { %2197 = vmatmul.mubr.bf16.gmra.mrb[52].mxu0 %v2049_v2 }
  0xb0   : > { %2204 = vmatprep.mubr.bf16.mxu0 %v2055_v3 }
  0xb1   : > { %3191 = vmatpush3.bf16.msra.mxu1 %v3392_v33 }
  0xb2   : > { %3192 = vmatprep.subr.bf16.mxu1 %v3406_v4 }
  0xb5   : > { %3193 = vmatpush3.bf16.msra.mxu1 %v3393_v12 }
  0xb6   : > { %3194 = vmatprep.subr.bf16.mxu1 %v3406_v4 }
  0xb7   : > { %2205 = vmatmul.mubr.bf16.gmra.mrb[56].mxu0 %v2053_v59 }
  0xb9   : > { %3195 = vmatpush3.bf16.msra.mxu1 %v3394_v19 }
  0xba   : > { %3196 = vmatprep.subr.bf16.mxu1 %v3406_v4 }
  0xbd   : > { %3197 = vmatpush3.bf16.msra.mxu1 %v3395_v23 }
  0xbe   : > { %3198 = vmatprep.subr.bf16.mxu1 %v3406_v4 }
  0xc1   : > { %3199 = vmatpush3.bf16.msra.mxu1 %v3396_v0 }
  0xc2   : > { %3200 = vmatprep.subr.bf16.mxu1 %v3406_v4 }
  0xc5   : > { %3201 = vmatpush3.bf16.msra.mxu1 %v3397_v32 }
  0xfa   : > { %v2885_v35 = vpop.f32.mrb[0].mxu0 }
  0xfb   : > { %v2919_v27 = vpop.f32.mrb[0].mxu1  ;;  %v2886_v22 = vpop.f32.mrb[1].mxu0 }
  0xfc   : > { %v2920_v14 = vpop.f32.mrb[1].mxu1  ;;  %v2887_v24 = vadd.f32 %v2886_v22, %v2885_v35  ;;  %v2888_v25 = vpop.f32.mrb[2].mxu0 }
  0xfd   : > { %v2921_v16 = vadd.f32 %v2920_v14, %v2919_v27  ;;  %v2922_v17 = vpop.f32.mrb[2].mxu1  ;;  %v2889_v28 = vpop.f32.mrb[3].mxu0 }
  0xfe   : > { %v2923_v18 = vpop.f32.mrb[3].mxu1  ;;  %v2890_v38 = vadd.f32 %v2889_v28, %v2888_v25 }
  0xff   : > { %v2924_v9 = vadd.f32 %v2923_v18, %v2922_v17  ;;  %v682_v13 = vadd.f32 %v2921_v16, %v2887_v24 }
 0x101   : > { %v685_v29 = vadd.f32 %v2924_v9, %v2890_v38 }
 0x102   : > { %v2891_v46 = vpop.f32.mrb[4].mxu0 }
 0x103   : > { %v2925_v26 = vpop.f32.mrb[4].mxu1  ;;  %v2892_v21 = vpop.f32.mrb[5].mxu0 }
 0x104   : > { %v2926_v15 = vpop.f32.mrb[5].mxu1  ;;  %v2893_v47 = vadd.f32 %v2892_v21, %v2891_v46  ;;  %v2894_v5 = vpop.f32.mrb[6].mxu0 }
 0x105   : > { %v2927_v41 = vadd.f32 %v2926_v15, %v2925_v26  ;;  %v2928_v44 = vpop.f32.mrb[6].mxu1  ;;  %v2895_v48 = vpop.f32.mrb[7].mxu0 }
 0x106   : > { %v2929_v20 = vpop.f32.mrb[7].mxu1  ;;  %v2896_v49 = vadd.f32 %v2895_v48, %v2894_v5 }
 0x107   : > { %v2930_v31 = vadd.f32 %v2929_v20, %v2928_v44  ;;  %v690_v7 = vadd.f32 %v2927_v41, %v2893_v47 }
 0x109   : > { %v693_v50 = vadd.f32 %v2930_v31, %v2896_v49 }
 0x10a   : > { %v2897_v51 = vpop.f32.mrb[8].mxu0 }
 0x10b   : > { %v2931_v40 = vpop.f32.mrb[8].mxu1  ;;  %v2898_v52 = vpop.f32.mrb[9].mxu0 }
 0x10c   : > { %v2932_v42 = vpop.f32.mrb[9].mxu1  ;;  %v2899_v53 = vadd.f32 %v2898_v52, %v2897_v51  ;;  %v2900_v54 = vpop.f32.mrb[10].mxu0 }
 0x10d   : > { %v2933_v45 = vadd.f32 %v2932_v42, %v2931_v40  ;;  %v2934_v36 = vpop.f32.mrb[10].mxu1  ;;  %v2901_v55 = vpop.f32.mrb[11].mxu0 }
 0x10e   : > { %v2935_v30 = vpop.f32.mrb[11].mxu1  ;;  %v2902_v56 = vadd.f32 %v2901_v55, %v2900_v54 }
 0x10f   : > { %v2936_v39 = vadd.f32 %v2935_v30, %v2934_v36  ;;  %v698_v8 = vadd.f32 %v2933_v45, %v2899_v53 }
 0x111   : > { %v701_v43 = vadd.f32 %v2936_v39, %v2902_v56 }
 0x11a   : > { %v2953_v60 = vpop.f32.mrb[12].mxu0 }
 0x11b   : > { %v2987_v57 = vpop.f32.mrb[12].mxu1  ;;  %v2954_v37 = vpop.f32.mrb[13].mxu0 }
 0x11c   : > { %v2988_v58 = vpop.f32.mrb[13].mxu1  ;;  %v2955_v34 = vadd.f32 %v2954_v37, %v2953_v60  ;;  %v2956_v62 = vpop.f32.mrb[14].mxu0 }
 0x11d   : > { %v2989_v61 = vadd.f32 %v2988_v58, %v2987_v57  ;;  %v2990_v6 = vpop.f32.mrb[14].mxu1  ;;  %v2957_v3 = vpop.f32.mrb[15].mxu0 }
 0x11e   : > { %v2991_v1 = vpop.f32.mrb[15].mxu1  ;;  %v911_v10 = vadd.f32 %v2955_v34, %v682_v13  ;;  %v2958_v59 = vadd.f32 %v2957_v3, %v2956_v62 }
 0x11f   : > { %v2992_v2 = vadd.f32 %v2991_v1, %v2990_v6 }
 0x120   : > { %v912_v63 = vadd.f32 %v2958_v59, %v685_v29  ;;  %v1115_v11 = vadd.f32 %v2989_v61, %v911_v10 }
 0x122   : > { %v1116_v27 = vadd.f32 %v2992_v2, %v912_v63  ;;  %v2959_v14 = vpop.f32.mrb[16].mxu0 }
 0x123   : > { %v2993_v33 = vpop.f32.mrb[16].mxu1  ;;  %v2960_v19 = vpop.f32.mrb[17].mxu0 }
 0x124   : > { %v2994_v12 = vpop.f32.mrb[17].mxu1  ;;  %v2961_v9 = vadd.f32 %v2960_v19, %v2959_v14  ;;  %v2962_v35 = vpop.f32.mrb[18].mxu0 }
 0x125   : > { %v2995_v16 = vadd.f32 %v2994_v12, %v2993_v33  ;;  %v2996_v17 = vpop.f32.mrb[18].mxu1  ;;  %v2963_v23 = vpop.f32.mrb[19].mxu0 }
 0x126   : > { %v2997_v18 = vpop.f32.mrb[19].mxu1  ;;  %v913_v24 = vadd.f32 %v2961_v9, %v690_v7  ;;  %v2964_v25 = vadd.f32 %v2963_v23, %v2962_v35 }
 0x127   : > { %v2998_v22 = vadd.f32 %v2997_v18, %v2996_v17 }
 0x128   : > { %v914_v26 = vadd.f32 %v2964_v25, %v693_v50  ;;  %v1117_v28 = vadd.f32 %v2995_v16, %v913_v24 }
 0x12a   : > { %v1118_v38 = vadd.f32 %v2998_v22, %v914_v26  ;;  %v2965_v41 = vpop.f32.mrb[20].mxu0 }
 0x12b   : > { %v2999_v15 = vpop.f32.mrb[20].mxu1  ;;  %v2966_v0 = vpop.f32.mrb[21].mxu0 }
 0x12c   : > { %v3000_v13 = vpop.f32.mrb[21].mxu1  ;;  %v2967_v31 = vadd.f32 %v2966_v0, %v2965_v41  ;;  %v2968_v32 = vpop.f32.mrb[22].mxu0 }
 0x12d   : > { %v3001_v44 = vadd.f32 %v3000_v13, %v2999_v15  ;;  %v3002_v20 = vpop.f32.mrb[22].mxu1  ;;  %v2969_v42 = vpop.f32.mrb[23].mxu0 }
 0x12e   : > { %v3003_v29 = vpop.f32.mrb[23].mxu1  ;;  %v915_v45 = vadd.f32 %v2967_v31, %v698_v8  ;;  %v2970_v36 = vadd.f32 %v2969_v42, %v2968_v32 }
 0x12f   : > { %v3004_v40 = vadd.f32 %v3003_v29, %v3002_v20 }
 0x130   : > { %v916_v46 = vadd.f32 %v2970_v36, %v701_v43  ;;  %v1119_v30 = vadd.f32 %v3001_v44, %v915_v45 }
 0x132   : > { %v1120_v21 = vadd.f32 %v3004_v40, %v916_v46 }
 0x13a   : > { %v3021_v5 = vpop.f32.mrb[24].mxu0 }
 0x13b   : > { %v3055_v39 = vpop.f32.mrb[24].mxu1  ;;  %v3022_v49 = vpop.f32.mrb[25].mxu0 }
 0x13c   : > { %v3056_v47 = vpop.f32.mrb[25].mxu1  ;;  %v3023_v51 = vadd.f32 %v3022_v49, %v3021_v5  ;;  %v3024_v52 = vpop.f32.mrb[26].mxu0 }
 0x13d   : > { %v3057_v48 = vadd.f32 %v3056_v47, %v3055_v39  ;;  %v3058_v7 = vpop.f32.mrb[26].mxu1  ;;  %v3025_v54 = vpop.f32.mrb[27].mxu0 }
 0x13e   : > { %v3059_v50 = vpop.f32.mrb[27].mxu1  ;;  %v1374_v55 = vadd.f32 %v3023_v51, %v1115_v11  ;;  %v3026_v56 = vadd.f32 %v3025_v54, %v3024_v52 }
 0x13f   : > { %v3060_v53 = vadd.f32 %v3059_v50, %v3058_v7 }
 0x140   : > { %v1375_v57 = vadd.f32 %v3026_v56, %v1116_v27  ;;  %v1586_v58 = vadd.f32 %v3057_v48, %v1374_v55 }
 0x142   : > { %v1587_v43 = vadd.f32 %v3060_v53, %v1375_v57  ;;  %v3027_v61 = vpop.f32.mrb[28].mxu0 }
 0x143   : > { %v3061_v8 = vpop.f32.mrb[28].mxu1  ;;  %v3028_v1 = vpop.f32.mrb[29].mxu0 }
 0x144   : > { %v3062_v60 = vpop.f32.mrb[29].mxu1  ;;  %v3029_v62 = vadd.f32 %v3028_v1, %v3027_v61  ;;  %v3030_v2 = vpop.f32.mrb[30].mxu0 }
 0x145   : > { %v3063_v6 = vadd.f32 %v3062_v60, %v3061_v8  ;;  %v3064_v37 = vpop.f32.mrb[30].mxu1  ;;  %v3031_v10 = vpop.f32.mrb[31].mxu0 }
 0x146   : > { %v3065_v34 = vpop.f32.mrb[31].mxu1  ;;  %v1376_v59 = vadd.f32 %v3029_v62, %v1117_v28  ;;  %v3032_v63 = vadd.f32 %v3031_v10, %v3030_v2 }
 0x147   : > { %v3066_v3 = vadd.f32 %v3065_v34, %v3064_v37 }
 0x148   : > { %v1377_v33 = vadd.f32 %v3032_v63, %v1118_v38  ;;  %v1588_v12 = vadd.f32 %v3063_v6, %v1376_v59 }
 0x14a   : > { %v1589_v27 = vadd.f32 %v3066_v3, %v1377_v33  ;;  %v3033_v16 = vpop.f32.mrb[32].mxu0 }
 0x14b   : > { %v3067_v11 = vpop.f32.mrb[32].mxu1  ;;  %v3034_v18 = vpop.f32.mrb[33].mxu0 }
 0x14c   : > { %v3068_v14 = vpop.f32.mrb[33].mxu1  ;;  %v3035_v35 = vadd.f32 %v3034_v18, %v3033_v16  ;;  %v3036_v22 = vpop.f32.mrb[34].mxu0  ;;  %v2857_v18 = vld [vmem:[%s4162_s2] ss:$0 sm:$0xff] }
 0x14d   : > { %v3069_v17 = vadd.f32 %v3068_v14, %v3067_v11  ;;  %v3070_v19 = vpop.f32.mrb[34].mxu1  ;;  %v3037_v24 = vpop.f32.mrb[35].mxu0 }
 0x14e   : > { %v3071_v9 = vpop.f32.mrb[35].mxu1  ;;  %v1378_v25 = vadd.f32 %v3035_v35, %v1119_v30  ;;  %v3038_v26 = vadd.f32 %v3037_v24, %v3036_v22 }
 0x14f   : > { %v3072_v23 = vadd.f32 %v3071_v9, %v3070_v19 }
 0x150   : > { %v1379_v15 = vadd.f32 %v3038_v26, %v1120_v21  ;;  %v1590_v13 = vadd.f32 %v3069_v17, %v1378_v25 }
 0x152   : > { %v1591_v28 = vadd.f32 %v3072_v23, %v1379_v15 }
 0x15a   : > { %v3089_v38 = vpop.f32.mrb[36].mxu0 }
 0x15b   : > { %v3123_v41 = vpop.f32.mrb[36].mxu1  ;;  %v3090_v20 = vpop.f32.mrb[37].mxu0 }
 0x15c   : > { %v3124_v44 = vpop.f32.mrb[37].mxu1  ;;  %v3091_v31 = vadd.f32 %v3090_v20, %v3089_v38  ;;  %v3092_v32 = vpop.f32.mrb[38].mxu0 }
 0x15d   : > { %v3125_v0 = vadd.f32 %v3124_v44, %v3123_v41  ;;  %v3126_v29 = vpop.f32.mrb[38].mxu1  ;;  %v3093_v42 = vpop.f32.mrb[39].mxu0 }
 0x15e   : > { %v3127_v40 = vpop.f32.mrb[39].mxu1  ;;  %v1782_v36 = vadd.f32 %v3091_v31, %v1586_v58  ;;  %v3094_v46 = vadd.f32 %v3093_v42, %v3092_v32 }
 0x15f   : > { %v3128_v45 = vadd.f32 %v3127_v40, %v3126_v29 }
 0x160   : > { %v1783_v39 = vadd.f32 %v3094_v46, %v1587_v43  ;;  %v2009_v47 = vadd.f32 %v3125_v0, %v1782_v36 }
 0x162   : > { %v2010_v5 = vadd.f32 %v3128_v45, %v1783_v39  ;;  %v3095_v21 = vpop.f32.mrb[40].mxu0 }
 0x163   : > { %v3129_v30 = vpop.f32.mrb[40].mxu1  ;;  %v3096_v7 = vpop.f32.mrb[41].mxu0 }
 0x164   : > { %v3130_v48 = vpop.f32.mrb[41].mxu1  ;;  %v3097_v51 = vadd.f32 %v3096_v7, %v3095_v21  ;;  %v3098_v52 = vpop.f32.mrb[42].mxu0 }
 0x165   : > { %v3131_v49 = vadd.f32 %v3130_v48, %v3129_v30  ;;  %v3132_v50 = vpop.f32.mrb[42].mxu1  ;;  %v3099_v54 = vpop.f32.mrb[43].mxu0 }
 0x166   : > { %v3133_v53 = vpop.f32.mrb[43].mxu1  ;;  %v1784_v56 = vadd.f32 %v3097_v51, %v1588_v12  ;;  %v3100_v57 = vadd.f32 %v3099_v54, %v3098_v52  ;;  %v2858_v54 = vld [vmem:[%s4164_s4] ss:$0 sm:$0xff] }
 0x167   : > { %v3134_v55 = vadd.f32 %v3133_v53, %v3132_v50 }
 0x168   : > { %v1785_v8 = vadd.f32 %v3100_v57, %v1589_v27  ;;  %v2011_v60 = vadd.f32 %v3131_v49, %v1784_v56 }
 0x16a   : > { %v2012_v61 = vadd.f32 %v3134_v55, %v1785_v8  ;;  %v3101_v43 = vpop.f32.mrb[44].mxu0 }
 0x16b   : > { %v3135_v58 = vpop.f32.mrb[44].mxu1  ;;  %v3102_v37 = vpop.f32.mrb[45].mxu0 }
 0x16c   : > { %v3136_v6 = vpop.f32.mrb[45].mxu1  ;;  %v3103_v62 = vadd.f32 %v3102_v37, %v3101_v43  ;;  %v3104_v2 = vpop.f32.mrb[46].mxu0 }
 0x16d   : > { %v3137_v1 = vadd.f32 %v3136_v6, %v3135_v58  ;;  %v3138_v34 = vpop.f32.mrb[46].mxu1  ;;  %v3105_v10 = vpop.f32.mrb[47].mxu0 }
 0x16e   : > { %v3139_v3 = vpop.f32.mrb[47].mxu1  ;;  %v1786_v63 = vadd.f32 %v3103_v62, %v1590_v13  ;;  %v3106_v33 = vadd.f32 %v3105_v10, %v3104_v2 }
 0x16f   : > { %v3140_v59 = vadd.f32 %v3139_v3, %v3138_v34 }
 0x170   : > { %v1787_v11 = vadd.f32 %v3106_v33, %v1591_v28  ;;  %v2013_v14 = vadd.f32 %v3137_v1, %v1786_v63 }
 0x172   : > { %v2014_v12 = vadd.f32 %v3140_v59, %v1787_v11 }
 0x17a   : > { %v3157_v16 = vpop.f32.mrb[48].mxu0 }
 0x17b   : > { %v3158_v27 = vpop.f32.mrb[49].mxu0 }
 0x17c   : > { %v3159_v17 = vadd.f32 %v3158_v27, %v3157_v16  ;;  %v3160_v19 = vpop.f32.mrb[50].mxu0 }
 0x17d   : > { %v3161_v9 = vpop.f32.mrb[51].mxu0 }
 0x17e   : > { %v2213_v35 = vadd.f32 %v3159_v17, %v2009_v47  ;;  %v3162_v22 = vadd.f32 %v3161_v9, %v3160_v19 }
 0x180   : > { %v2226_v23 = vadd.f32 %v2857_v18, %v2213_v35  ;;  %v2214_v24 = vadd.f32 %v3162_v22, %v2010_v5 }
 0x182   : > { %v2227_v25 = vadd.f32 %v2857_v18, %v2214_v24  ;;  %v3163_v26 = vpop.f32.mrb[52].mxu0  ;;  %v2232_v13 = vmax.f32 %v2226_v23, 0.0 }
 0x183   : > { %v3164_v15 = vpop.f32.mrb[53].mxu0 }
 0x184   : > { %v2233_v28 = vmax.f32 %v2227_v25, 0.0  ;;  %v3165_v41 = vadd.f32 %v3164_v15, %v3163_v26  ;;  %v3166_v38 = vpop.f32.mrb[54].mxu0 }
 0x185   : > { %v3167_v44 = vpop.f32.mrb[55].mxu0 }
 0x186   : > { %v2238_v20 = vpack.c.bf16 %v2233_v28, %v2232_v13  ;;  %v2215_v0 = vadd.f32 %v3165_v41, %v2011_v60  ;;  %v3168_v29 = vadd.f32 %v3167_v44, %v3166_v38 }
 0x188   : > { %v2228_v31 = vadd.f32 %v2857_v18, %v2215_v0  ;;  %v2216_v32 = vadd.f32 %v3168_v29, %v2012_v61  ;;  %3203 = vmatmul.mubr.bf16.vlgmr.msra.gmra.mrb[48].mxu1 %v2238_v20 }
 0x189   : > { %3206 = vmatprep.mubr.msk.bf16.mxu1 %vm3407_vm2, %v3406_v4 }
 0x18a   : > { %v2229_v40 = vadd.f32 %v2857_v18, %v2216_v32  ;;  %v3169_v42 = vpop.f32.mrb[56].mxu0  ;;  %v2234_v36 = vmax.f32 %v2228_v31, 0.0 }
 0x18b   : > { %v3170_v45 = vpop.f32.mrb[57].mxu0 }
 0x18c   : > { %v2235_v46 = vmax.f32 %v2229_v40, 0.0  ;;  %v3171_v39 = vadd.f32 %v3170_v45, %v3169_v42  ;;  %v3172_v47 = vpop.f32.mrb[58].mxu0 }
 0x18d   : > { %v3173_v30 = vpop.f32.mrb[59].mxu0 }
 0x18e   : > { %v2217_v5 = vadd.f32 %v3171_v39, %v2013_v14  ;;  %v3174_v21 = vadd.f32 %v3173_v30, %v3172_v47  ;;  %v2239_v48 = vpack.c.bf16 %v2235_v46, %v2234_v36 }
 0x190   : > { %v2230_v7 = vadd.f32 %v2857_v18, %v2217_v5  ;;  %v2218_v49 = vadd.f32 %v3174_v21, %v2014_v12  ;;  %3207 = vmatmul.mubr.bf16.gmra.mrb[52].mxu1 %v2239_v48 }
 0x191   : > { %3210 = vmatprep.mubr.msk.bf16.mxu1 %vm3407_vm2, %v3406_v4 }
 0x192   : > { %v2231_v50 = vadd.f32 %v2857_v18, %v2218_v49  ;;  %v2236_v51 = vmax.f32 %v2230_v7, 0.0 }
 0x194   : > { %v2237_v52 = vmax.f32 %v2231_v50, 0.0 }
 0x196   : > { %v2240_v53 = vpack.c.bf16 %v2237_v52, %v2236_v51 }
 0x198   : > { %3211 = vmatmul.mubr.bf16.gmra.mrb[56].mxu1 %v2240_v53 }
 0x25b   : > { %v2346_v55 = vpop.f32.mrb[48].mxu1 }
 0x25c   : > { %v2347_v56 = vadd.f32 %v2858_v54, %v2346_v55  ;;  %v3204_v57 = vpop.f32.mrb[49].mxu1 }
 0x25d   : > { %v2349_v8 = vpop.f32.mrb[50].mxu1 }
 0x25e   : > { %2369 = vst [vmem:[%s224_s22] sm:$0xff] %v2347_v56  ;;  %v2350_v4 = vadd.f32 %v2858_v54, %v2349_v8  ;;  %v3205_v60 = vpop.f32.mrb[51].mxu1 }
 0x260   : > { %2370 = vst [vmem:[%s224_s22 + $0x8] sm:$0xff] %v2350_v4 }
 0x263   : > { %v2354_v58 = vpop.f32.mrb[52].mxu1 }
 0x264   : > { %v2355_v61 = vadd.f32 %v2858_v54, %v2354_v58  ;;  %v3208_v43 = vpop.f32.mrb[53].mxu1 }
 0x265   : > { %v2357_v6 = vpop.f32.mrb[54].mxu1 }
 0x266   : > { %2371 = vst [vmem:[%s224_s22 + $0x10] sm:$0xff] %v2355_v61  ;;  %v2358_v37 = vadd.f32 %v2858_v54, %v2357_v6  ;;  %v3209_v1 = vpop.f32.mrb[55].mxu1 }
 0x268   : > { %2372 = vst [vmem:[%s224_s22 + $0x18] sm:$0xff] %v2358_v37 }
 0x26b   : > { %v2362_v34 = vpop.f32.mrb[56].mxu1 }
 0x26c   : > { %v2363_v62 = vadd.f32 %v2858_v54, %v2362_v34  ;;  %v3212_v2 = vpop.f32.mrb[57].mxu1 }
 0x26d   : > { %v2365_v3 = vpop.f32.mrb[58].mxu1 }
 0x26e   : > { %2373 = vst [vmem:[%s224_s22 + $0x20] sm:$0xff] %v2363_v62  ;;  %v2366_v10 = vadd.f32 %v2858_v54, %v2365_v3  ;;  %v3213_v59 = vpop.f32.mrb[59].mxu1 }
 0x270   : > { %2374 = vst [vmem:[%s224_s22 + $0x28] sm:$0xff] %v2366_v10 }
 0x271 PF: > { %s15_s18 = sadd.s32 1, %s3404_s18  }
 0x272   : > { %p12_p4 = scmp.ge.s32.totalorder %s15_s18, 4  }
 0x274   :  { %14 = sbr.rel (!%p12_p4) target bundleno = 1 (0x1), region = 78 }

</bundles_post_ra>
